<compile_context>
chip_gen: v7x
topology: tpu7x:2x2x1
jax: 0.10.0
libtpu: 0.0.40
codegen_flags: <defaults>
</compile_context>

<pallas_src>
import jax
import jax.numpy as jnp
import numpy as np
from jax.experimental import pallas as pl
from jax.experimental.pallas import tpu as pltpu


def _att_bigru_kernel(x_ref, mask_ref,
                      wi_f_ref, wh_f_ref, bi_f_ref, bh_f_ref,
                      wi_b_ref, wh_b_ref, bi_b_ref, bh_b_ref,
                      wlin_f_ref, wlin_b_ref, blin_ref, watt_ref,
                      out_ref,
                      gi_f_ref, gi_b_ref, enc_f_ref, enc_b_ref):
    f32 = jnp.float32
    Bp = out_ref.shape[1]          # padded batch (multiple of 8)
    H = out_ref.shape[2]
    TB = x_ref.shape[0]            # T * Bp
    T = TB // Bp
    H2 = 2 * H
    H3 = 3 * H

    # ---- Phase 1: hoisted input projections (one big MXU matmul / direction) ----
    x2 = x_ref[...]                                                   # (T*Bp, I)
    gi_f_ref[...] = (jnp.dot(x2, wi_f_ref[...], preferred_element_type=f32)
                     + bi_f_ref[...])                                 # (T*Bp, 3H)
    gi_b_ref[...] = (jnp.dot(x2, wi_b_ref[...], preferred_element_type=f32)
                     + bi_b_ref[...])

    # ---- Loop-invariant loads / broadcasts, hoisted out of the recurrences ----
    wh_f = wh_f_ref[...]                                              # (H, 3H)
    wh_b = wh_b_ref[...]
    bh_f = jnp.broadcast_to(bh_f_ref[...], (Bp, H3))                  # (Bp, 3H)
    bh_b = jnp.broadcast_to(bh_b_ref[...], (Bp, H3))
    h0 = jnp.zeros((Bp, H), f32)
    unroll = T <= 32

    def step(gi, h, wh, bh, m):
        # PyTorch GRU cell: gate order r, z, n along the fused 3H axis.
        gh = jnp.dot(h, wh, preferred_element_type=f32) + bh          # (Bp, 3H)
        r = jax.nn.sigmoid(gi[:, 0:H] + gh[:, 0:H])
        z = jax.nn.sigmoid(gi[:, H:H2] + gh[:, H:H2])
        n = jnp.tanh(gi[:, H2:H3] + r * gh[:, H2:H3])
        # Packed-sequence semantics: zero outputs past each sequence length.
        return ((1.0 - z) * n + z * h) * m

    # ---- Phase 2a: forward-direction recurrence ----
    def fwd_body(t, h):
        row = pl.multiple_of(t * Bp, Bp)
        h_new = step(gi_f_ref[pl.ds(row, Bp), :], h, wh_f, bh_f,
                     mask_ref[pl.ds(row, Bp), :])
        enc_f_ref[pl.ds(row, Bp), :] = h_new
        return h_new
    jax.lax.fori_loop(0, T, fwd_body, h0, unroll=unroll)

    # ---- Phase 2b: backward-direction recurrence ----
    # Iterating T-1..0 with a masked carry makes each sequence's reverse pass
    # start from h = 0 at its own last valid step (pad_packed_sequence layout).
    def bwd_body(i, h):
        row = pl.multiple_of((T - 1 - i) * Bp, Bp)
        h_new = step(gi_b_ref[pl.ds(row, Bp), :], h, wh_b, bh_b,
                     mask_ref[pl.ds(row, Bp), :])
        enc_b_ref[pl.ds(row, Bp), :] = h_new
        return h_new
    jax.lax.fori_loop(0, T, bwd_body, h0, unroll=unroll)

    # ---- Phase 3: vectorized attention over all T*Bp rows ----
    ef = enc_f_ref[...]                                               # (T*Bp, H)
    eb = enc_b_ref[...]
    emb = jnp.tanh(jnp.dot(ef, wlin_f_ref[...], preferred_element_type=f32)
                   + jnp.dot(eb, wlin_b_ref[...], preferred_element_type=f32)
                   + blin_ref[...])                                   # (T*Bp, 2H)
    # Attention score as VPU multiply + lane reduce (avoid an N=1 matmul).
    s = jnp.sum(emb * watt_ref[...], axis=-1, keepdims=True)          # (T*Bp, 1)
    # Masked softmax exactly as PyTorch: exp (no max-sub), * mask, den = sum + 1e-4.
    e = jnp.exp(s) * mask_ref[...]                                    # (T*Bp, 1)

    num_f = jnp.sum((e * ef).reshape(T, Bp, H), axis=0)               # (Bp, H)
    num_b = jnp.sum((e * eb).reshape(T, Bp, H), axis=0)               # (Bp, H)
    den = jnp.sum(e.reshape(T, Bp, 1), axis=0)                        # (Bp, 1)
    inv = 1.0 / (den + 1e-4)
    out_ref[0] = num_f * inv
    out_ref[1] = num_b * inv


def attentional_bigru(x, lengths, p):
    """x: (T, B, I) f32, lengths: (B,) i32 (sorted desc, lengths[0] == T) -> (B, 2H)."""
    T, B, I = x.shape
    H = p["wh_f"].shape[0]
    Bp = max(8, ((B + 7) // 8) * 8)          # pad batch to a multiple of 8 sublanes

    # ---- plain-JAX glue: batch padding, flattening, padding mask ----
    x_p = jnp.zeros((T, Bp, I), jnp.float32).at[:, :B, :].set(x)
    len_p = jnp.zeros((Bp,), jnp.int32).at[:B].set(lengths)
    mask = (jnp.arange(T)[:, None] < len_p[None, :]).astype(jnp.float32)   # (T, Bp)
    x_flat = x_p.reshape(T * Bp, I)
    mask_flat = mask.reshape(T * Bp, 1)

    args = (x_flat, mask_flat,
            p["wi_f"], p["wh_f"], p["bi_f"], p["bh_f"],
            p["wi_b"], p["wh_b"], p["bi_b"], p["bh_b"],
            p["wlin_f"], p["wlin_b"], p["blin"], p["watt"])

    # Explicit VMEM budget (inputs + output + scratch) with headroom.
    n_bytes = sum(int(np.prod(a.shape)) * 4 for a in args)
    n_bytes += 4 * (2 * Bp * H)                                 # output
    n_bytes += 4 * (2 * T * Bp * 3 * H + 2 * T * Bp * H)        # scratches
    vmem_limit = int(min(96 * 1024 * 1024, max(32 * 1024 * 1024, 2 * n_bytes)))

    vmem = pl.BlockSpec(memory_space=pltpu.MemorySpace.VMEM)
    out = pl.pallas_call(
        _att_bigru_kernel,
        out_shape=jax.ShapeDtypeStruct((2, Bp, H), jnp.float32),
        in_specs=[vmem] * len(args),
        out_specs=vmem,
        scratch_shapes=[pltpu.VMEM((T * Bp, 3 * H), jnp.float32),   # gi forward
                        pltpu.VMEM((T * Bp, 3 * H), jnp.float32),   # gi backward
                        pltpu.VMEM((T * Bp, H), jnp.float32),       # enc forward
                        pltpu.VMEM((T * Bp, H), jnp.float32)],      # enc backward
        compiler_params=pltpu.CompilerParams(vmem_limit_bytes=vmem_limit),
    )(*args)
    return jnp.concatenate([out[0, :B], out[1, :B]], axis=-1)       # (B, 2H)


def init_params(key, inp_size, hid_size):
    """Deterministic synthetic parameters, pre-fused / pre-transposed:
    wi_* (I, 3H), wh_* (H, 3H), bi_*/bh_* (1, 3H) with gate order [r, z, n];
    wlin_f/wlin_b = W_lin.T split by direction (H, 2H); blin (1, 2H);
    watt = att_w weight as a row (1, 2H)."""
    H, I = hid_size, inp_size
    k = float(1.0 / np.sqrt(H))
    ks = jax.random.split(key, 12)
    u = lambda kk, shape: jax.random.uniform(kk, shape, jnp.float32, -k, k)
    return dict(
        wi_f=u(ks[0], (I, 3 * H)), wh_f=u(ks[1], (H, 3 * H)),
        bi_f=u(ks[2], (1, 3 * H)), bh_f=u(ks[3], (1, 3 * H)),
        wi_b=u(ks[4], (I, 3 * H)), wh_b=u(ks[5], (H, 3 * H)),
        bi_b=u(ks[6], (1, 3 * H)), bh_b=u(ks[7], (1, 3 * H)),
        wlin_f=u(ks[8], (H, 2 * H)), wlin_b=u(ks[9], (H, 2 * H)),
        blin=u(ks[10], (1, 2 * H)),
        watt=u(ks[11], (1, 2 * H)),
    )


def reference(x, lengths, p):
    """Pure-JAX reference of the PyTorch forward (for validation)."""
    T, B, _ = x.shape
    H = p["wh_f"].shape[0]
    mask = (jnp.arange(T)[:, None] < lengths[None, :]).astype(jnp.float32)  # (T, B)

    def cell(x_t, h, wi, wh, bi, bh):
        gi = x_t @ wi + bi
        gh = h @ wh + bh
        r = jax.nn.sigmoid(gi[:, :H] + gh[:, :H])
        z = jax.nn.sigmoid(gi[:, H:2 * H] + gh[:, H:2 * H])
        n = jnp.tanh(gi[:, 2 * H:] + r * gh[:, 2 * H:])
        return (1.0 - z) * n + z * h

    h0 = jnp.zeros((B, H), jnp.float32)

    def fwd_step(h, inp):
        x_t, m_t = inp
        h_new = cell(x_t, h, p["wi_f"], p["wh_f"], p["bi_f"], p["bh_f"]) * m_t[:, None]
        return h_new, h_new
    _, enc_f = jax.lax.scan(fwd_step, h0, (x, mask))

    def bwd_step(h, inp):
        x_t, m_t = inp
        h_new = cell(x_t, h, p["wi_b"], p["wh_b"], p["bi_b"], p["bh_b"]) * m_t[:, None]
        return h_new, h_new
    _, enc_b_rev = jax.lax.scan(bwd_step, h0, (x[::-1], mask[::-1]))
    enc_b = enc_b_rev[::-1]

    enc = jnp.concatenate([enc_f, enc_b], axis=-1)                      # (T, B, 2H)
    emb = jnp.tanh(enc_f @ p["wlin_f"] + enc_b @ p["wlin_b"] + p["blin"])
    scores = jnp.sum(emb * p["watt"], axis=-1)                          # (T, B)
    e = jnp.exp(scores) * mask
    den = e.sum(0) + 1e-4
    att = e / den
    return (att[..., None] * enc).sum(0)                                # (B, 2H)


if __name__ == "__main__":
    T, B, I, H = 8, 4, 16, 32
    key = jax.random.PRNGKey(0)
    kx, kp = jax.random.split(key)

    x = jax.random.normal(kx, (T, B, I), jnp.float32)
    lengths = jnp.array([8, 6, 5, 3], dtype=jnp.int32)   # sorted desc, lengths[0] == T
    params = init_params(kp, I, H)

    out = jax.block_until_ready(attentional_bigru(x, lengths, params))
    assert out.shape == (B, 2 * H)

    ref = jax.block_until_ready(reference(x, lengths, params))
    np.testing.assert_allclose(np.asarray(out), np.asarray(ref), rtol=1e-4, atol=1e-4)

    print("KERNEL_OK")
</pallas_src>

<mosaic_0001>
module attributes {stable_mosaic.version = 11 : i64} {
  func.func @_att_bigru_kernel(%arg0: memref<64x16xf32, #tpu.memory_space<vmem>>, %arg1: memref<64x1xf32, #tpu.memory_space<vmem>>, %arg2: memref<16x96xf32, #tpu.memory_space<vmem>>, %arg3: memref<32x96xf32, #tpu.memory_space<vmem>>, %arg4: memref<1x96xf32, #tpu.memory_space<vmem>>, %arg5: memref<1x96xf32, #tpu.memory_space<vmem>>, %arg6: memref<16x96xf32, #tpu.memory_space<vmem>>, %arg7: memref<32x96xf32, #tpu.memory_space<vmem>>, %arg8: memref<1x96xf32, #tpu.memory_space<vmem>>, %arg9: memref<1x96xf32, #tpu.memory_space<vmem>>, %arg10: memref<32x64xf32, #tpu.memory_space<vmem>>, %arg11: memref<32x64xf32, #tpu.memory_space<vmem>>, %arg12: memref<1x64xf32, #tpu.memory_space<vmem>>, %arg13: memref<1x64xf32, #tpu.memory_space<vmem>>, %arg14: memref<2x8x32xf32, #tpu.memory_space<vmem>>, %arg15: memref<64x96xf32, #tpu.memory_space<vmem>>, %arg16: memref<64x96xf32, #tpu.memory_space<vmem>>, %arg17: memref<64x32xf32, #tpu.memory_space<vmem>>, %arg18: memref<64x32xf32, #tpu.memory_space<vmem>>) attributes {dimension_semantics = [], scalar_prefetch = 0 : i64, scratch_operands = 4 : i64, tpu.core_type = #tpu.core_type<tc>} {
    %c0 = arith.constant 0 : index
    %c0_0 = arith.constant 0 : index
    %0 = vector.load %arg0[%c0, %c0_0] : memref<64x16xf32, #tpu.memory_space<vmem>>, vector<64x16xf32>
    %c0_1 = arith.constant 0 : index
    %c0_2 = arith.constant 0 : index
    %1 = vector.load %arg2[%c0_1, %c0_2] : memref<16x96xf32, #tpu.memory_space<vmem>>, vector<16x96xf32>
    %cst = arith.constant dense<0.000000e+00> : vector<64x96xf32>
    %2 = tpu.matmul %0, %1, %cst {dimension_numbers = #tpu.dot_dimension_numbers<[1], [0], [0], [1], [0, 0, 1, 1], [], []>} : vector<64x16xf32>, vector<16x96xf32>, vector<64x96xf32> -> vector<64x96xf32>
    %c0_3 = arith.constant 0 : index
    %c0_4 = arith.constant 0 : index
    %3 = vector.load %arg4[%c0_3, %c0_4] : memref<1x96xf32, #tpu.memory_space<vmem>>, vector<1x96xf32>
    %4 = vector.broadcast %3 : vector<1x96xf32> to vector<64x96xf32>
    %5 = arith.addf %2, %4 : vector<64x96xf32>
    %c0_5 = arith.constant 0 : index
    %c0_6 = arith.constant 0 : index
    %6 = vector.load %arg15[%c0_5, %c0_6] : memref<64x96xf32, #tpu.memory_space<vmem>>, vector<64x96xf32>
    tpu.vector_store %arg15[%c0_5, %c0_6], %5 {strides = array<i32>} : memref<64x96xf32, #tpu.memory_space<vmem>>, vector<64x96xf32>,
    %c0_7 = arith.constant 0 : index
    %c0_8 = arith.constant 0 : index
    %7 = vector.load %arg6[%c0_7, %c0_8] : memref<16x96xf32, #tpu.memory_space<vmem>>, vector<16x96xf32>
    %cst_9 = arith.constant dense<0.000000e+00> : vector<64x96xf32>
    %8 = tpu.matmul %0, %7, %cst_9 {dimension_numbers = #tpu.dot_dimension_numbers<[1], [0], [0], [1], [0, 0, 1, 1], [], []>} : vector<64x16xf32>, vector<16x96xf32>, vector<64x96xf32> -> vector<64x96xf32>
    %c0_10 = arith.constant 0 : index
    %c0_11 = arith.constant 0 : index
    %9 = vector.load %arg8[%c0_10, %c0_11] : memref<1x96xf32, #tpu.memory_space<vmem>>, vector<1x96xf32>
    %10 = vector.broadcast %9 : vector<1x96xf32> to vector<64x96xf32>
    %11 = arith.addf %8, %10 : vector<64x96xf32>
    %c0_12 = arith.constant 0 : index
    %c0_13 = arith.constant 0 : index
    %12 = vector.load %arg16[%c0_12, %c0_13] : memref<64x96xf32, #tpu.memory_space<vmem>>, vector<64x96xf32>
    tpu.vector_store %arg16[%c0_12, %c0_13], %11 {strides = array<i32>} : memref<64x96xf32, #tpu.memory_space<vmem>>, vector<64x96xf32>,
    %c0_14 = arith.constant 0 : index
    %c0_15 = arith.constant 0 : index
    %13 = vector.load %arg3[%c0_14, %c0_15] : memref<32x96xf32, #tpu.memory_space<vmem>>, vector<32x96xf32>
    %c0_16 = arith.constant 0 : index
    %c0_17 = arith.constant 0 : index
    %14 = vector.load %arg7[%c0_16, %c0_17] : memref<32x96xf32, #tpu.memory_space<vmem>>, vector<32x96xf32>
    %c0_18 = arith.constant 0 : index
    %c0_19 = arith.constant 0 : index
    %15 = vector.load %arg5[%c0_18, %c0_19] : memref<1x96xf32, #tpu.memory_space<vmem>>, vector<1x96xf32>
    %16 = vector.shape_cast %15 : vector<1x96xf32> to vector<1x96xf32>
    %17 = vector.broadcast %16 : vector<1x96xf32> to vector<8x96xf32>
    %c0_20 = arith.constant 0 : index
    %c0_21 = arith.constant 0 : index
    %18 = vector.load %arg9[%c0_20, %c0_21] : memref<1x96xf32, #tpu.memory_space<vmem>>, vector<1x96xf32>
    %19 = vector.shape_cast %18 : vector<1x96xf32> to vector<1x96xf32>
    %20 = vector.broadcast %19 : vector<1x96xf32> to vector<8x96xf32>
    %cst_22 = arith.constant 0.000000e+00 : f32
    %21 = vector.broadcast %cst_22 : f32 to vector<8x32xf32>
    %c0_i32 = arith.constant 0 : i32
    %c8_i32 = arith.constant 8 : i32
    %22 = arith.muli %c0_i32, %c8_i32 : i32
    %23 = tpu.assume_multiple %22, 8 : i32
    %24 = arith.index_cast %23 : i32 to index
    %c0_23 = arith.constant 0 : index
    %25 = vector.load %arg15[%24, %c0_23] : memref<64x96xf32, #tpu.memory_space<vmem>>, vector<8x96xf32>
    %26 = arith.index_cast %23 : i32 to index
    %c0_24 = arith.constant 0 : index
    %27 = vector.load %arg1[%26, %c0_24] : memref<64x1xf32, #tpu.memory_space<vmem>>, vector<8x1xf32>
    %cst_25 = arith.constant dense<0.000000e+00> : vector<8x96xf32>
    %28 = tpu.matmul %21, %13, %cst_25 {dimension_numbers = #tpu.dot_dimension_numbers<[1], [0], [0], [1], [0, 0, 1, 1], [], []>} : vector<8x32xf32>, vector<32x96xf32>, vector<8x96xf32> -> vector<8x96xf32>
    %29 = arith.addf %28, %17 : vector<8x96xf32>
    %30 = vector.extract_strided_slice %25 {offsets = [0, 0], sizes = [8, 32], strides = [1, 1]} : vector<8x96xf32> to vector<8x32xf32>
    %31 = vector.extract_strided_slice %29 {offsets = [0, 0], sizes = [8, 32], strides = [1, 1]} : vector<8x96xf32> to vector<8x32xf32>
    %32 = arith.addf %30, %31 : vector<8x32xf32>
    %33 = arith.negf %32 : vector<8x32xf32>
    %34 = math.exp %33 : vector<8x32xf32>
    %cst_26 = arith.constant 1.000000e+00 : f32
    %35 = vector.broadcast %cst_26 : f32 to vector<8x32xf32>
    %36 = arith.addf %35, %34 : vector<8x32xf32>
    %37 = arith.divf %35, %36 : vector<8x32xf32>
    %38 = vector.extract_strided_slice %25 {offsets = [0, 32], sizes = [8, 32], strides = [1, 1]} : vector<8x96xf32> to vector<8x32xf32>
    %39 = vector.extract_strided_slice %29 {offsets = [0, 32], sizes = [8, 32], strides = [1, 1]} : vector<8x96xf32> to vector<8x32xf32>
    %40 = arith.addf %38, %39 : vector<8x32xf32>
    %41 = arith.negf %40 : vector<8x32xf32>
    %42 = math.exp %41 : vector<8x32xf32>
    %cst_27 = arith.constant 1.000000e+00 : f32
    %43 = vector.broadcast %cst_27 : f32 to vector<8x32xf32>
    %44 = arith.addf %43, %42 : vector<8x32xf32>
    %45 = arith.divf %43, %44 : vector<8x32xf32>
    %46 = vector.extract_strided_slice %25 {offsets = [0, 64], sizes = [8, 32], strides = [1, 1]} : vector<8x96xf32> to vector<8x32xf32>
    %47 = vector.extract_strided_slice %29 {offsets = [0, 64], sizes = [8, 32], strides = [1, 1]} : vector<8x96xf32> to vector<8x32xf32>
    %48 = arith.mulf %37, %47 : vector<8x32xf32>
    %49 = arith.addf %46, %48 : vector<8x32xf32>
    %50 = math.tanh %49 : vector<8x32xf32>
    %cst_28 = arith.constant 1.000000e+00 : f32
    %51 = vector.broadcast %cst_28 : f32 to vector<8x32xf32>
    %52 = arith.subf %51, %45 : vector<8x32xf32>
    %53 = arith.mulf %52, %50 : vector<8x32xf32>
    %54 = arith.mulf %45, %21 : vector<8x32xf32>
    %55 = arith.addf %53, %54 : vector<8x32xf32>
    %56 = vector.broadcast %27 : vector<8x1xf32> to vector<8x32xf32>
    %57 = arith.mulf %55, %56 : vector<8x32xf32>
    %58 = arith.index_cast %23 : i32 to index
    %c0_29 = arith.constant 0 : index
    %59 = vector.load %arg17[%58, %c0_29] : memref<64x32xf32, #tpu.memory_space<vmem>>, vector<8x32xf32>
    tpu.vector_store %arg17[%58, %c0_29], %57 {strides = array<i32>} : memref<64x32xf32, #tpu.memory_space<vmem>>, vector<8x32xf32>,
    %c1_i32 = arith.constant 1 : i32
    %c8_i32_30 = arith.constant 8 : i32
    %60 = arith.muli %c1_i32, %c8_i32_30 : i32
    %61 = tpu.assume_multiple %60, 8 : i32
    %62 = arith.index_cast %61 : i32 to index
    %c0_31 = arith.constant 0 : index
    %63 = vector.load %arg15[%62, %c0_31] : memref<64x96xf32, #tpu.memory_space<vmem>>, vector<8x96xf32>
    %64 = arith.index_cast %61 : i32 to index
    %c0_32 = arith.constant 0 : index
    %65 = vector.load %arg1[%64, %c0_32] : memref<64x1xf32, #tpu.memory_space<vmem>>, vector<8x1xf32>
    %cst_33 = arith.constant dense<0.000000e+00> : vector<8x96xf32>
    %66 = tpu.matmul %57, %13, %cst_33 {dimension_numbers = #tpu.dot_dimension_numbers<[1], [0], [0], [1], [0, 0, 1, 1], [], []>} : vector<8x32xf32>, vector<32x96xf32>, vector<8x96xf32> -> vector<8x96xf32>
    %67 = arith.addf %66, %17 : vector<8x96xf32>
    %68 = vector.extract_strided_slice %63 {offsets = [0, 0], sizes = [8, 32], strides = [1, 1]} : vector<8x96xf32> to vector<8x32xf32>
    %69 = vector.extract_strided_slice %67 {offsets = [0, 0], sizes = [8, 32], strides = [1, 1]} : vector<8x96xf32> to vector<8x32xf32>
    %70 = arith.addf %68, %69 : vector<8x32xf32>
    %71 = arith.negf %70 : vector<8x32xf32>
    %72 = math.exp %71 : vector<8x32xf32>
    %cst_34 = arith.constant 1.000000e+00 : f32
    %73 = vector.broadcast %cst_34 : f32 to vector<8x32xf32>
    %74 = arith.addf %73, %72 : vector<8x32xf32>
    %75 = arith.divf %73, %74 : vector<8x32xf32>
    %76 = vector.extract_strided_slice %63 {offsets = [0, 32], sizes = [8, 32], strides = [1, 1]} : vector<8x96xf32> to vector<8x32xf32>
    %77 = vector.extract_strided_slice %67 {offsets = [0, 32], sizes = [8, 32], strides = [1, 1]} : vector<8x96xf32> to vector<8x32xf32>
    %78 = arith.addf %76, %77 : vector<8x32xf32>
    %79 = arith.negf %78 : vector<8x32xf32>
    %80 = math.exp %79 : vector<8x32xf32>
    %cst_35 = arith.constant 1.000000e+00 : f32
    %81 = vector.broadcast %cst_35 : f32 to vector<8x32xf32>
    %82 = arith.addf %81, %80 : vector<8x32xf32>
    %83 = arith.divf %81, %82 : vector<8x32xf32>
    %84 = vector.extract_strided_slice %63 {offsets = [0, 64], sizes = [8, 32], strides = [1, 1]} : vector<8x96xf32> to vector<8x32xf32>
    %85 = vector.extract_strided_slice %67 {offsets = [0, 64], sizes = [8, 32], strides = [1, 1]} : vector<8x96xf32> to vector<8x32xf32>
    %86 = arith.mulf %75, %85 : vector<8x32xf32>
    %87 = arith.addf %84, %86 : vector<8x32xf32>
    %88 = math.tanh %87 : vector<8x32xf32>
    %cst_36 = arith.constant 1.000000e+00 : f32
    %89 = vector.broadcast %cst_36 : f32 to vector<8x32xf32>
    %90 = arith.subf %89, %83 : vector<8x32xf32>
    %91 = arith.mulf %90, %88 : vector<8x32xf32>
    %92 = arith.mulf %83, %57 : vector<8x32xf32>
    %93 = arith.addf %91, %92 : vector<8x32xf32>
    %94 = vector.broadcast %65 : vector<8x1xf32> to vector<8x32xf32>
    %95 = arith.mulf %93, %94 : vector<8x32xf32>
    %96 = arith.index_cast %61 : i32 to index
    %c0_37 = arith.constant 0 : index
    %97 = vector.load %arg17[%96, %c0_37] : memref<64x32xf32, #tpu.memory_space<vmem>>, vector<8x32xf32>
    tpu.vector_store %arg17[%96, %c0_37], %95 {strides = array<i32>} : memref<64x32xf32, #tpu.memory_space<vmem>>, vector<8x32xf32>,
    %c2_i32 = arith.constant 2 : i32
    %c8_i32_38 = arith.constant 8 : i32
    %98 = arith.muli %c2_i32, %c8_i32_38 : i32
    %99 = tpu.assume_multiple %98, 8 : i32
    %100 = arith.index_cast %99 : i32 to index
    %c0_39 = arith.constant 0 : index
    %101 = vector.load %arg15[%100, %c0_39] : memref<64x96xf32, #tpu.memory_space<vmem>>, vector<8x96xf32>
    %102 = arith.index_cast %99 : i32 to index
    %c0_40 = arith.constant 0 : index
    %103 = vector.load %arg1[%102, %c0_40] : memref<64x1xf32, #tpu.memory_space<vmem>>, vector<8x1xf32>
    %cst_41 = arith.constant dense<0.000000e+00> : vector<8x96xf32>
    %104 = tpu.matmul %95, %13, %cst_41 {dimension_numbers = #tpu.dot_dimension_numbers<[1], [0], [0], [1], [0, 0, 1, 1], [], []>} : vector<8x32xf32>, vector<32x96xf32>, vector<8x96xf32> -> vector<8x96xf32>
    %105 = arith.addf %104, %17 : vector<8x96xf32>
    %106 = vector.extract_strided_slice %101 {offsets = [0, 0], sizes = [8, 32], strides = [1, 1]} : vector<8x96xf32> to vector<8x32xf32>
    %107 = vector.extract_strided_slice %105 {offsets = [0, 0], sizes = [8, 32], strides = [1, 1]} : vector<8x96xf32> to vector<8x32xf32>
    %108 = arith.addf %106, %107 : vector<8x32xf32>
    %109 = arith.negf %108 : vector<8x32xf32>
    %110 = math.exp %109 : vector<8x32xf32>
    %cst_42 = arith.constant 1.000000e+00 : f32
    %111 = vector.broadcast %cst_42 : f32 to vector<8x32xf32>
    %112 = arith.addf %111, %110 : vector<8x32xf32>
    %113 = arith.divf %111, %112 : vector<8x32xf32>
    %114 = vector.extract_strided_slice %101 {offsets = [0, 32], sizes = [8, 32], strides = [1, 1]} : vector<8x96xf32> to vector<8x32xf32>
    %115 = vector.extract_strided_slice %105 {offsets = [0, 32], sizes = [8, 32], strides = [1, 1]} : vector<8x96xf32> to vector<8x32xf32>
    %116 = arith.addf %114, %115 : vector<8x32xf32>
    %117 = arith.negf %116 : vector<8x32xf32>
    %118 = math.exp %117 : vector<8x32xf32>
    %cst_43 = arith.constant 1.000000e+00 : f32
    %119 = vector.broadcast %cst_43 : f32 to vector<8x32xf32>
    %120 = arith.addf %119, %118 : vector<8x32xf32>
    %121 = arith.divf %119, %120 : vector<8x32xf32>
    %122 = vector.extract_strided_slice %101 {offsets = [0, 64], sizes = [8, 32], strides = [1, 1]} : vector<8x96xf32> to vector<8x32xf32>
    %123 = vector.extract_strided_slice %105 {offsets = [0, 64], sizes = [8, 32], strides = [1, 1]} : vector<8x96xf32> to vector<8x32xf32>
    %124 = arith.mulf %113, %123 : vector<8x32xf32>
    %125 = arith.addf %122, %124 : vector<8x32xf32>
    %126 = math.tanh %125 : vector<8x32xf32>
    %cst_44 = arith.constant 1.000000e+00 : f32
    %127 = vector.broadcast %cst_44 : f32 to vector<8x32xf32>
    %128 = arith.subf %127, %121 : vector<8x32xf32>
    %129 = arith.mulf %128, %126 : vector<8x32xf32>
    %130 = arith.mulf %121, %95 : vector<8x32xf32>
    %131 = arith.addf %129, %130 : vector<8x32xf32>
    %132 = vector.broadcast %103 : vector<8x1xf32> to vector<8x32xf32>
    %133 = arith.mulf %131, %132 : vector<8x32xf32>
    %134 = arith.index_cast %99 : i32 to index
    %c0_45 = arith.constant 0 : index
    %135 = vector.load %arg17[%134, %c0_45] : memref<64x32xf32, #tpu.memory_space<vmem>>, vector<8x32xf32>
    tpu.vector_store %arg17[%134, %c0_45], %133 {strides = array<i32>} : memref<64x32xf32, #tpu.memory_space<vmem>>, vector<8x32xf32>,
    %c3_i32 = arith.constant 3 : i32
    %c8_i32_46 = arith.constant 8 : i32
    %136 = arith.muli %c3_i32, %c8_i32_46 : i32
    %137 = tpu.assume_multiple %136, 8 : i32
    %138 = arith.index_cast %137 : i32 to index
    %c0_47 = arith.constant 0 : index
    %139 = vector.load %arg15[%138, %c0_47] : memref<64x96xf32, #tpu.memory_space<vmem>>, vector<8x96xf32>
    %140 = arith.index_cast %137 : i32 to index
    %c0_48 = arith.constant 0 : index
    %141 = vector.load %arg1[%140, %c0_48] : memref<64x1xf32, #tpu.memory_space<vmem>>, vector<8x1xf32>
    %cst_49 = arith.constant dense<0.000000e+00> : vector<8x96xf32>
    %142 = tpu.matmul %133, %13, %cst_49 {dimension_numbers = #tpu.dot_dimension_numbers<[1], [0], [0], [1], [0, 0, 1, 1], [], []>} : vector<8x32xf32>, vector<32x96xf32>, vector<8x96xf32> -> vector<8x96xf32>
    %143 = arith.addf %142, %17 : vector<8x96xf32>
    %144 = vector.extract_strided_slice %139 {offsets = [0, 0], sizes = [8, 32], strides = [1, 1]} : vector<8x96xf32> to vector<8x32xf32>
    %145 = vector.extract_strided_slice %143 {offsets = [0, 0], sizes = [8, 32], strides = [1, 1]} : vector<8x96xf32> to vector<8x32xf32>
    %146 = arith.addf %144, %145 : vector<8x32xf32>
    %147 = arith.negf %146 : vector<8x32xf32>
    %148 = math.exp %147 : vector<8x32xf32>
    %cst_50 = arith.constant 1.000000e+00 : f32
    %149 = vector.broadcast %cst_50 : f32 to vector<8x32xf32>
    %150 = arith.addf %149, %148 : vector<8x32xf32>
    %151 = arith.divf %149, %150 : vector<8x32xf32>
    %152 = vector.extract_strided_slice %139 {offsets = [0, 32], sizes = [8, 32], strides = [1, 1]} : vector<8x96xf32> to vector<8x32xf32>
    %153 = vector.extract_strided_slice %143 {offsets = [0, 32], sizes = [8, 32], strides = [1, 1]} : vector<8x96xf32> to vector<8x32xf32>
    %154 = arith.addf %152, %153 : vector<8x32xf32>
    %155 = arith.negf %154 : vector<8x32xf32>
    %156 = math.exp %155 : vector<8x32xf32>
    %cst_51 = arith.constant 1.000000e+00 : f32
    %157 = vector.broadcast %cst_51 : f32 to vector<8x32xf32>
    %158 = arith.addf %157, %156 : vector<8x32xf32>
    %159 = arith.divf %157, %158 : vector<8x32xf32>
    %160 = vector.extract_strided_slice %139 {offsets = [0, 64], sizes = [8, 32], strides = [1, 1]} : vector<8x96xf32> to vector<8x32xf32>
    %161 = vector.extract_strided_slice %143 {offsets = [0, 64], sizes = [8, 32], strides = [1, 1]} : vector<8x96xf32> to vector<8x32xf32>
    %162 = arith.mulf %151, %161 : vector<8x32xf32>
    %163 = arith.addf %160, %162 : vector<8x32xf32>
    %164 = math.tanh %163 : vector<8x32xf32>
    %cst_52 = arith.constant 1.000000e+00 : f32
    %165 = vector.broadcast %cst_52 : f32 to vector<8x32xf32>
    %166 = arith.subf %165, %159 : vector<8x32xf32>
    %167 = arith.mulf %166, %164 : vector<8x32xf32>
    %168 = arith.mulf %159, %133 : vector<8x32xf32>
    %169 = arith.addf %167, %168 : vector<8x32xf32>
    %170 = vector.broadcast %141 : vector<8x1xf32> to vector<8x32xf32>
    %171 = arith.mulf %169, %170 : vector<8x32xf32>
    %172 = arith.index_cast %137 : i32 to index
    %c0_53 = arith.constant 0 : index
    %173 = vector.load %arg17[%172, %c0_53] : memref<64x32xf32, #tpu.memory_space<vmem>>, vector<8x32xf32>
    tpu.vector_store %arg17[%172, %c0_53], %171 {strides = array<i32>} : memref<64x32xf32, #tpu.memory_space<vmem>>, vector<8x32xf32>,
    %c4_i32 = arith.constant 4 : i32
    %c8_i32_54 = arith.constant 8 : i32
    %174 = arith.muli %c4_i32, %c8_i32_54 : i32
    %175 = tpu.assume_multiple %174, 8 : i32
    %176 = arith.index_cast %175 : i32 to index
    %c0_55 = arith.constant 0 : index
    %177 = vector.load %arg15[%176, %c0_55] : memref<64x96xf32, #tpu.memory_space<vmem>>, vector<8x96xf32>
    %178 = arith.index_cast %175 : i32 to index
    %c0_56 = arith.constant 0 : index
    %179 = vector.load %arg1[%178, %c0_56] : memref<64x1xf32, #tpu.memory_space<vmem>>, vector<8x1xf32>
    %cst_57 = arith.constant dense<0.000000e+00> : vector<8x96xf32>
    %180 = tpu.matmul %171, %13, %cst_57 {dimension_numbers = #tpu.dot_dimension_numbers<[1], [0], [0], [1], [0, 0, 1, 1], [], []>} : vector<8x32xf32>, vector<32x96xf32>, vector<8x96xf32> -> vector<8x96xf32>
    %181 = arith.addf %180, %17 : vector<8x96xf32>
    %182 = vector.extract_strided_slice %177 {offsets = [0, 0], sizes = [8, 32], strides = [1, 1]} : vector<8x96xf32> to vector<8x32xf32>
    %183 = vector.extract_strided_slice %181 {offsets = [0, 0], sizes = [8, 32], strides = [1, 1]} : vector<8x96xf32> to vector<8x32xf32>
    %184 = arith.addf %182, %183 : vector<8x32xf32>
    %185 = arith.negf %184 : vector<8x32xf32>
    %186 = math.exp %185 : vector<8x32xf32>
    %cst_58 = arith.constant 1.000000e+00 : f32
    %187 = vector.broadcast %cst_58 : f32 to vector<8x32xf32>
    %188 = arith.addf %187, %186 : vector<8x32xf32>
    %189 = arith.divf %187, %188 : vector<8x32xf32>
    %190 = vector.extract_strided_slice %177 {offsets = [0, 32], sizes = [8, 32], strides = [1, 1]} : vector<8x96xf32> to vector<8x32xf32>
    %191 = vector.extract_strided_slice %181 {offsets = [0, 32], sizes = [8, 32], strides = [1, 1]} : vector<8x96xf32> to vector<8x32xf32>
    %192 = arith.addf %190, %191 : vector<8x32xf32>
    %193 = arith.negf %192 : vector<8x32xf32>
    %194 = math.exp %193 : vector<8x32xf32>
    %cst_59 = arith.constant 1.000000e+00 : f32
    %195 = vector.broadcast %cst_59 : f32 to vector<8x32xf32>
    %196 = arith.addf %195, %194 : vector<8x32xf32>
    %197 = arith.divf %195, %196 : vector<8x32xf32>
    %198 = vector.extract_strided_slice %177 {offsets = [0, 64], sizes = [8, 32], strides = [1, 1]} : vector<8x96xf32> to vector<8x32xf32>
    %199 = vector.extract_strided_slice %181 {offsets = [0, 64], sizes = [8, 32], strides = [1, 1]} : vector<8x96xf32> to vector<8x32xf32>
    %200 = arith.mulf %189, %199 : vector<8x32xf32>
    %201 = arith.addf %198, %200 : vector<8x32xf32>
    %202 = math.tanh %201 : vector<8x32xf32>
    %cst_60 = arith.constant 1.000000e+00 : f32
    %203 = vector.broadcast %cst_60 : f32 to vector<8x32xf32>
    %204 = arith.subf %203, %197 : vector<8x32xf32>
    %205 = arith.mulf %204, %202 : vector<8x32xf32>
    %206 = arith.mulf %197, %171 : vector<8x32xf32>
    %207 = arith.addf %205, %206 : vector<8x32xf32>
    %208 = vector.broadcast %179 : vector<8x1xf32> to vector<8x32xf32>
    %209 = arith.mulf %207, %208 : vector<8x32xf32>
    %210 = arith.index_cast %175 : i32 to index
    %c0_61 = arith.constant 0 : index
    %211 = vector.load %arg17[%210, %c0_61] : memref<64x32xf32, #tpu.memory_space<vmem>>, vector<8x32xf32>
    tpu.vector_store %arg17[%210, %c0_61], %209 {strides = array<i32>} : memref<64x32xf32, #tpu.memory_space<vmem>>, vector<8x32xf32>,
    %c5_i32 = arith.constant 5 : i32
    %c8_i32_62 = arith.constant 8 : i32
    %212 = arith.muli %c5_i32, %c8_i32_62 : i32
    %213 = tpu.assume_multiple %212, 8 : i32
    %214 = arith.index_cast %213 : i32 to index
    %c0_63 = arith.constant 0 : index
    %215 = vector.load %arg15[%214, %c0_63] : memref<64x96xf32, #tpu.memory_space<vmem>>, vector<8x96xf32>
    %216 = arith.index_cast %213 : i32 to index
    %c0_64 = arith.constant 0 : index
    %217 = vector.load %arg1[%216, %c0_64] : memref<64x1xf32, #tpu.memory_space<vmem>>, vector<8x1xf32>
    %cst_65 = arith.constant dense<0.000000e+00> : vector<8x96xf32>
    %218 = tpu.matmul %209, %13, %cst_65 {dimension_numbers = #tpu.dot_dimension_numbers<[1], [0], [0], [1], [0, 0, 1, 1], [], []>} : vector<8x32xf32>, vector<32x96xf32>, vector<8x96xf32> -> vector<8x96xf32>
    %219 = arith.addf %218, %17 : vector<8x96xf32>
    %220 = vector.extract_strided_slice %215 {offsets = [0, 0], sizes = [8, 32], strides = [1, 1]} : vector<8x96xf32> to vector<8x32xf32>
    %221 = vector.extract_strided_slice %219 {offsets = [0, 0], sizes = [8, 32], strides = [1, 1]} : vector<8x96xf32> to vector<8x32xf32>
    %222 = arith.addf %220, %221 : vector<8x32xf32>
    %223 = arith.negf %222 : vector<8x32xf32>
    %224 = math.exp %223 : vector<8x32xf32>
    %cst_66 = arith.constant 1.000000e+00 : f32
    %225 = vector.broadcast %cst_66 : f32 to vector<8x32xf32>
    %226 = arith.addf %225, %224 : vector<8x32xf32>
    %227 = arith.divf %225, %226 : vector<8x32xf32>
    %228 = vector.extract_strided_slice %215 {offsets = [0, 32], sizes = [8, 32], strides = [1, 1]} : vector<8x96xf32> to vector<8x32xf32>
    %229 = vector.extract_strided_slice %219 {offsets = [0, 32], sizes = [8, 32], strides = [1, 1]} : vector<8x96xf32> to vector<8x32xf32>
    %230 = arith.addf %228, %229 : vector<8x32xf32>
    %231 = arith.negf %230 : vector<8x32xf32>
    %232 = math.exp %231 : vector<8x32xf32>
    %cst_67 = arith.constant 1.000000e+00 : f32
    %233 = vector.broadcast %cst_67 : f32 to vector<8x32xf32>
    %234 = arith.addf %233, %232 : vector<8x32xf32>
    %235 = arith.divf %233, %234 : vector<8x32xf32>
    %236 = vector.extract_strided_slice %215 {offsets = [0, 64], sizes = [8, 32], strides = [1, 1]} : vector<8x96xf32> to vector<8x32xf32>
    %237 = vector.extract_strided_slice %219 {offsets = [0, 64], sizes = [8, 32], strides = [1, 1]} : vector<8x96xf32> to vector<8x32xf32>
    %238 = arith.mulf %227, %237 : vector<8x32xf32>
    %239 = arith.addf %236, %238 : vector<8x32xf32>
    %240 = math.tanh %239 : vector<8x32xf32>
    %cst_68 = arith.constant 1.000000e+00 : f32
    %241 = vector.broadcast %cst_68 : f32 to vector<8x32xf32>
    %242 = arith.subf %241, %235 : vector<8x32xf32>
    %243 = arith.mulf %242, %240 : vector<8x32xf32>
    %244 = arith.mulf %235, %209 : vector<8x32xf32>
    %245 = arith.addf %243, %244 : vector<8x32xf32>
    %246 = vector.broadcast %217 : vector<8x1xf32> to vector<8x32xf32>
    %247 = arith.mulf %245, %246 : vector<8x32xf32>
    %248 = arith.index_cast %213 : i32 to index
    %c0_69 = arith.constant 0 : index
    %249 = vector.load %arg17[%248, %c0_69] : memref<64x32xf32, #tpu.memory_space<vmem>>, vector<8x32xf32>
    tpu.vector_store %arg17[%248, %c0_69], %247 {strides = array<i32>} : memref<64x32xf32, #tpu.memory_space<vmem>>, vector<8x32xf32>,
    %c6_i32 = arith.constant 6 : i32
    %c8_i32_70 = arith.constant 8 : i32
    %250 = arith.muli %c6_i32, %c8_i32_70 : i32
    %251 = tpu.assume_multiple %250, 8 : i32
    %252 = arith.index_cast %251 : i32 to index
    %c0_71 = arith.constant 0 : index
    %253 = vector.load %arg15[%252, %c0_71] : memref<64x96xf32, #tpu.memory_space<vmem>>, vector<8x96xf32>
    %254 = arith.index_cast %251 : i32 to index
    %c0_72 = arith.constant 0 : index
    %255 = vector.load %arg1[%254, %c0_72] : memref<64x1xf32, #tpu.memory_space<vmem>>, vector<8x1xf32>
    %cst_73 = arith.constant dense<0.000000e+00> : vector<8x96xf32>
    %256 = tpu.matmul %247, %13, %cst_73 {dimension_numbers = #tpu.dot_dimension_numbers<[1], [0], [0], [1], [0, 0, 1, 1], [], []>} : vector<8x32xf32>, vector<32x96xf32>, vector<8x96xf32> -> vector<8x96xf32>
    %257 = arith.addf %256, %17 : vector<8x96xf32>
    %258 = vector.extract_strided_slice %253 {offsets = [0, 0], sizes = [8, 32], strides = [1, 1]} : vector<8x96xf32> to vector<8x32xf32>
    %259 = vector.extract_strided_slice %257 {offsets = [0, 0], sizes = [8, 32], strides = [1, 1]} : vector<8x96xf32> to vector<8x32xf32>
    %260 = arith.addf %258, %259 : vector<8x32xf32>
    %261 = arith.negf %260 : vector<8x32xf32>
    %262 = math.exp %261 : vector<8x32xf32>
    %cst_74 = arith.constant 1.000000e+00 : f32
    %263 = vector.broadcast %cst_74 : f32 to vector<8x32xf32>
    %264 = arith.addf %263, %262 : vector<8x32xf32>
    %265 = arith.divf %263, %264 : vector<8x32xf32>
    %266 = vector.extract_strided_slice %253 {offsets = [0, 32], sizes = [8, 32], strides = [1, 1]} : vector<8x96xf32> to vector<8x32xf32>
    %267 = vector.extract_strided_slice %257 {offsets = [0, 32], sizes = [8, 32], strides = [1, 1]} : vector<8x96xf32> to vector<8x32xf32>
    %268 = arith.addf %266, %267 : vector<8x32xf32>
    %269 = arith.negf %268 : vector<8x32xf32>
    %270 = math.exp %269 : vector<8x32xf32>
    %cst_75 = arith.constant 1.000000e+00 : f32
    %271 = vector.broadcast %cst_75 : f32 to vector<8x32xf32>
    %272 = arith.addf %271, %270 : vector<8x32xf32>
    %273 = arith.divf %271, %272 : vector<8x32xf32>
    %274 = vector.extract_strided_slice %253 {offsets = [0, 64], sizes = [8, 32], strides = [1, 1]} : vector<8x96xf32> to vector<8x32xf32>
    %275 = vector.extract_strided_slice %257 {offsets = [0, 64], sizes = [8, 32], strides = [1, 1]} : vector<8x96xf32> to vector<8x32xf32>
    %276 = arith.mulf %265, %275 : vector<8x32xf32>
    %277 = arith.addf %274, %276 : vector<8x32xf32>
    %278 = math.tanh %277 : vector<8x32xf32>
    %cst_76 = arith.constant 1.000000e+00 : f32
    %279 = vector.broadcast %cst_76 : f32 to vector<8x32xf32>
    %280 = arith.subf %279, %273 : vector<8x32xf32>
    %281 = arith.mulf %280, %278 : vector<8x32xf32>
    %282 = arith.mulf %273, %247 : vector<8x32xf32>
    %283 = arith.addf %281, %282 : vector<8x32xf32>
    %284 = vector.broadcast %255 : vector<8x1xf32> to vector<8x32xf32>
    %285 = arith.mulf %283, %284 : vector<8x32xf32>
    %286 = arith.index_cast %251 : i32 to index
    %c0_77 = arith.constant 0 : index
    %287 = vector.load %arg17[%286, %c0_77] : memref<64x32xf32, #tpu.memory_space<vmem>>, vector<8x32xf32>
    tpu.vector_store %arg17[%286, %c0_77], %285 {strides = array<i32>} : memref<64x32xf32, #tpu.memory_space<vmem>>, vector<8x32xf32>,
    %c7_i32 = arith.constant 7 : i32
    %c8_i32_78 = arith.constant 8 : i32
    %288 = arith.muli %c7_i32, %c8_i32_78 : i32
    %289 = tpu.assume_multiple %288, 8 : i32
    %290 = arith.index_cast %289 : i32 to index
    %c0_79 = arith.constant 0 : index
    %291 = vector.load %arg15[%290, %c0_79] : memref<64x96xf32, #tpu.memory_space<vmem>>, vector<8x96xf32>
    %292 = arith.index_cast %289 : i32 to index
    %c0_80 = arith.constant 0 : index
    %293 = vector.load %arg1[%292, %c0_80] : memref<64x1xf32, #tpu.memory_space<vmem>>, vector<8x1xf32>
    %cst_81 = arith.constant dense<0.000000e+00> : vector<8x96xf32>
    %294 = tpu.matmul %285, %13, %cst_81 {dimension_numbers = #tpu.dot_dimension_numbers<[1], [0], [0], [1], [0, 0, 1, 1], [], []>} : vector<8x32xf32>, vector<32x96xf32>, vector<8x96xf32> -> vector<8x96xf32>
    %295 = arith.addf %294, %17 : vector<8x96xf32>
    %296 = vector.extract_strided_slice %291 {offsets = [0, 0], sizes = [8, 32], strides = [1, 1]} : vector<8x96xf32> to vector<8x32xf32>
    %297 = vector.extract_strided_slice %295 {offsets = [0, 0], sizes = [8, 32], strides = [1, 1]} : vector<8x96xf32> to vector<8x32xf32>
    %298 = arith.addf %296, %297 : vector<8x32xf32>
    %299 = arith.negf %298 : vector<8x32xf32>
    %300 = math.exp %299 : vector<8x32xf32>
    %cst_82 = arith.constant 1.000000e+00 : f32
    %301 = vector.broadcast %cst_82 : f32 to vector<8x32xf32>
    %302 = arith.addf %301, %300 : vector<8x32xf32>
    %303 = arith.divf %301, %302 : vector<8x32xf32>
    %304 = vector.extract_strided_slice %291 {offsets = [0, 32], sizes = [8, 32], strides = [1, 1]} : vector<8x96xf32> to vector<8x32xf32>
    %305 = vector.extract_strided_slice %295 {offsets = [0, 32], sizes = [8, 32], strides = [1, 1]} : vector<8x96xf32> to vector<8x32xf32>
    %306 = arith.addf %304, %305 : vector<8x32xf32>
    %307 = arith.negf %306 : vector<8x32xf32>
    %308 = math.exp %307 : vector<8x32xf32>
    %cst_83 = arith.constant 1.000000e+00 : f32
    %309 = vector.broadcast %cst_83 : f32 to vector<8x32xf32>
    %310 = arith.addf %309, %308 : vector<8x32xf32>
    %311 = arith.divf %309, %310 : vector<8x32xf32>
    %312 = vector.extract_strided_slice %291 {offsets = [0, 64], sizes = [8, 32], strides = [1, 1]} : vector<8x96xf32> to vector<8x32xf32>
    %313 = vector.extract_strided_slice %295 {offsets = [0, 64], sizes = [8, 32], strides = [1, 1]} : vector<8x96xf32> to vector<8x32xf32>
    %314 = arith.mulf %303, %313 : vector<8x32xf32>
    %315 = arith.addf %312, %314 : vector<8x32xf32>
    %316 = math.tanh %315 : vector<8x32xf32>
    %cst_84 = arith.constant 1.000000e+00 : f32
    %317 = vector.broadcast %cst_84 : f32 to vector<8x32xf32>
    %318 = arith.subf %317, %311 : vector<8x32xf32>
    %319 = arith.mulf %318, %316 : vector<8x32xf32>
    %320 = arith.mulf %311, %285 : vector<8x32xf32>
    %321 = arith.addf %319, %320 : vector<8x32xf32>
    %322 = vector.broadcast %293 : vector<8x1xf32> to vector<8x32xf32>
    %323 = arith.mulf %321, %322 : vector<8x32xf32>
    %324 = arith.index_cast %289 : i32 to index
    %c0_85 = arith.constant 0 : index
    %325 = vector.load %arg17[%324, %c0_85] : memref<64x32xf32, #tpu.memory_space<vmem>>, vector<8x32xf32>
    tpu.vector_store %arg17[%324, %c0_85], %323 {strides = array<i32>} : memref<64x32xf32, #tpu.memory_space<vmem>>, vector<8x32xf32>,
    %c8_i32_86 = arith.constant 8 : i32
    %c0_i32_87 = arith.constant 0 : i32
    %c7_i32_88 = arith.constant 7 : i32
    %326 = arith.subi %c7_i32_88, %c0_i32_87 : i32
    %c8_i32_89 = arith.constant 8 : i32
    %327 = arith.muli %326, %c8_i32_89 : i32
    %328 = tpu.assume_multiple %327, 8 : i32
    %329 = arith.index_cast %328 : i32 to index
    %c0_90 = arith.constant 0 : index
    %330 = vector.load %arg16[%329, %c0_90] : memref<64x96xf32, #tpu.memory_space<vmem>>, vector<8x96xf32>
    %331 = arith.index_cast %328 : i32 to index
    %c0_91 = arith.constant 0 : index
    %332 = vector.load %arg1[%331, %c0_91] : memref<64x1xf32, #tpu.memory_space<vmem>>, vector<8x1xf32>
    %cst_92 = arith.constant dense<0.000000e+00> : vector<8x96xf32>
    %333 = tpu.matmul %21, %14, %cst_92 {dimension_numbers = #tpu.dot_dimension_numbers<[1], [0], [0], [1], [0, 0, 1, 1], [], []>} : vector<8x32xf32>, vector<32x96xf32>, vector<8x96xf32> -> vector<8x96xf32>
    %334 = arith.addf %333, %20 : vector<8x96xf32>
    %335 = vector.extract_strided_slice %330 {offsets = [0, 0], sizes = [8, 32], strides = [1, 1]} : vector<8x96xf32> to vector<8x32xf32>
    %336 = vector.extract_strided_slice %334 {offsets = [0, 0], sizes = [8, 32], strides = [1, 1]} : vector<8x96xf32> to vector<8x32xf32>
    %337 = arith.addf %335, %336 : vector<8x32xf32>
    %338 = arith.negf %337 : vector<8x32xf32>
    %339 = math.exp %338 : vector<8x32xf32>
    %cst_93 = arith.constant 1.000000e+00 : f32
    %340 = vector.broadcast %cst_93 : f32 to vector<8x32xf32>
    %341 = arith.addf %340, %339 : vector<8x32xf32>
    %342 = arith.divf %340, %341 : vector<8x32xf32>
    %343 = vector.extract_strided_slice %330 {offsets = [0, 32], sizes = [8, 32], strides = [1, 1]} : vector<8x96xf32> to vector<8x32xf32>
    %344 = vector.extract_strided_slice %334 {offsets = [0, 32], sizes = [8, 32], strides = [1, 1]} : vector<8x96xf32> to vector<8x32xf32>
    %345 = arith.addf %343, %344 : vector<8x32xf32>
    %346 = arith.negf %345 : vector<8x32xf32>
    %347 = math.exp %346 : vector<8x32xf32>
    %cst_94 = arith.constant 1.000000e+00 : f32
    %348 = vector.broadcast %cst_94 : f32 to vector<8x32xf32>
    %349 = arith.addf %348, %347 : vector<8x32xf32>
    %350 = arith.divf %348, %349 : vector<8x32xf32>
    %351 = vector.extract_strided_slice %330 {offsets = [0, 64], sizes = [8, 32], strides = [1, 1]} : vector<8x96xf32> to vector<8x32xf32>
    %352 = vector.extract_strided_slice %334 {offsets = [0, 64], sizes = [8, 32], strides = [1, 1]} : vector<8x96xf32> to vector<8x32xf32>
    %353 = arith.mulf %342, %352 : vector<8x32xf32>
    %354 = arith.addf %351, %353 : vector<8x32xf32>
    %355 = math.tanh %354 : vector<8x32xf32>
    %cst_95 = arith.constant 1.000000e+00 : f32
    %356 = vector.broadcast %cst_95 : f32 to vector<8x32xf32>
    %357 = arith.subf %356, %350 : vector<8x32xf32>
    %358 = arith.mulf %357, %355 : vector<8x32xf32>
    %359 = arith.mulf %350, %21 : vector<8x32xf32>
    %360 = arith.addf %358, %359 : vector<8x32xf32>
    %361 = vector.broadcast %332 : vector<8x1xf32> to vector<8x32xf32>
    %362 = arith.mulf %360, %361 : vector<8x32xf32>
    %363 = arith.index_cast %328 : i32 to index
    %c0_96 = arith.constant 0 : index
    %364 = vector.load %arg18[%363, %c0_96] : memref<64x32xf32, #tpu.memory_space<vmem>>, vector<8x32xf32>
    tpu.vector_store %arg18[%363, %c0_96], %362 {strides = array<i32>} : memref<64x32xf32, #tpu.memory_space<vmem>>, vector<8x32xf32>,
    %c1_i32_97 = arith.constant 1 : i32
    %c7_i32_98 = arith.constant 7 : i32
    %365 = arith.subi %c7_i32_98, %c1_i32_97 : i32
    %c8_i32_99 = arith.constant 8 : i32
    %366 = arith.muli %365, %c8_i32_99 : i32
    %367 = tpu.assume_multiple %366, 8 : i32
    %368 = arith.index_cast %367 : i32 to index
    %c0_100 = arith.constant 0 : index
    %369 = vector.load %arg16[%368, %c0_100] : memref<64x96xf32, #tpu.memory_space<vmem>>, vector<8x96xf32>
    %370 = arith.index_cast %367 : i32 to index
    %c0_101 = arith.constant 0 : index
    %371 = vector.load %arg1[%370, %c0_101] : memref<64x1xf32, #tpu.memory_space<vmem>>, vector<8x1xf32>
    %cst_102 = arith.constant dense<0.000000e+00> : vector<8x96xf32>
    %372 = tpu.matmul %362, %14, %cst_102 {dimension_numbers = #tpu.dot_dimension_numbers<[1], [0], [0], [1], [0, 0, 1, 1], [], []>} : vector<8x32xf32>, vector<32x96xf32>, vector<8x96xf32> -> vector<8x96xf32>
    %373 = arith.addf %372, %20 : vector<8x96xf32>
    %374 = vector.extract_strided_slice %369 {offsets = [0, 0], sizes = [8, 32], strides = [1, 1]} : vector<8x96xf32> to vector<8x32xf32>
    %375 = vector.extract_strided_slice %373 {offsets = [0, 0], sizes = [8, 32], strides = [1, 1]} : vector<8x96xf32> to vector<8x32xf32>
    %376 = arith.addf %374, %375 : vector<8x32xf32>
    %377 = arith.negf %376 : vector<8x32xf32>
    %378 = math.exp %377 : vector<8x32xf32>
    %cst_103 = arith.constant 1.000000e+00 : f32
    %379 = vector.broadcast %cst_103 : f32 to vector<8x32xf32>
    %380 = arith.addf %379, %378 : vector<8x32xf32>
    %381 = arith.divf %379, %380 : vector<8x32xf32>
    %382 = vector.extract_strided_slice %369 {offsets = [0, 32], sizes = [8, 32], strides = [1, 1]} : vector<8x96xf32> to vector<8x32xf32>
    %383 = vector.extract_strided_slice %373 {offsets = [0, 32], sizes = [8, 32], strides = [1, 1]} : vector<8x96xf32> to vector<8x32xf32>
    %384 = arith.addf %382, %383 : vector<8x32xf32>
    %385 = arith.negf %384 : vector<8x32xf32>
    %386 = math.exp %385 : vector<8x32xf32>
    %cst_104 = arith.constant 1.000000e+00 : f32
    %387 = vector.broadcast %cst_104 : f32 to vector<8x32xf32>
    %388 = arith.addf %387, %386 : vector<8x32xf32>
    %389 = arith.divf %387, %388 : vector<8x32xf32>
    %390 = vector.extract_strided_slice %369 {offsets = [0, 64], sizes = [8, 32], strides = [1, 1]} : vector<8x96xf32> to vector<8x32xf32>
    %391 = vector.extract_strided_slice %373 {offsets = [0, 64], sizes = [8, 32], strides = [1, 1]} : vector<8x96xf32> to vector<8x32xf32>
    %392 = arith.mulf %381, %391 : vector<8x32xf32>
    %393 = arith.addf %390, %392 : vector<8x32xf32>
    %394 = math.tanh %393 : vector<8x32xf32>
    %cst_105 = arith.constant 1.000000e+00 : f32
    %395 = vector.broadcast %cst_105 : f32 to vector<8x32xf32>
    %396 = arith.subf %395, %389 : vector<8x32xf32>
    %397 = arith.mulf %396, %394 : vector<8x32xf32>
    %398 = arith.mulf %389, %362 : vector<8x32xf32>
    %399 = arith.addf %397, %398 : vector<8x32xf32>
    %400 = vector.broadcast %371 : vector<8x1xf32> to vector<8x32xf32>
    %401 = arith.mulf %399, %400 : vector<8x32xf32>
    %402 = arith.index_cast %367 : i32 to index
    %c0_106 = arith.constant 0 : index
    %403 = vector.load %arg18[%402, %c0_106] : memref<64x32xf32, #tpu.memory_space<vmem>>, vector<8x32xf32>
    tpu.vector_store %arg18[%402, %c0_106], %401 {strides = array<i32>} : memref<64x32xf32, #tpu.memory_space<vmem>>, vector<8x32xf32>,
    %c2_i32_107 = arith.constant 2 : i32
    %c7_i32_108 = arith.constant 7 : i32
    %404 = arith.subi %c7_i32_108, %c2_i32_107 : i32
    %c8_i32_109 = arith.constant 8 : i32
    %405 = arith.muli %404, %c8_i32_109 : i32
    %406 = tpu.assume_multiple %405, 8 : i32
    %407 = arith.index_cast %406 : i32 to index
    %c0_110 = arith.constant 0 : index
    %408 = vector.load %arg16[%407, %c0_110] : memref<64x96xf32, #tpu.memory_space<vmem>>, vector<8x96xf32>
    %409 = arith.index_cast %406 : i32 to index
    %c0_111 = arith.constant 0 : index
    %410 = vector.load %arg1[%409, %c0_111] : memref<64x1xf32, #tpu.memory_space<vmem>>, vector<8x1xf32>
    %cst_112 = arith.constant dense<0.000000e+00> : vector<8x96xf32>
    %411 = tpu.matmul %401, %14, %cst_112 {dimension_numbers = #tpu.dot_dimension_numbers<[1], [0], [0], [1], [0, 0, 1, 1], [], []>} : vector<8x32xf32>, vector<32x96xf32>, vector<8x96xf32> -> vector<8x96xf32>
    %412 = arith.addf %411, %20 : vector<8x96xf32>
    %413 = vector.extract_strided_slice %408 {offsets = [0, 0], sizes = [8, 32], strides = [1, 1]} : vector<8x96xf32> to vector<8x32xf32>
    %414 = vector.extract_strided_slice %412 {offsets = [0, 0], sizes = [8, 32], strides = [1, 1]} : vector<8x96xf32> to vector<8x32xf32>
    %415 = arith.addf %413, %414 : vector<8x32xf32>
    %416 = arith.negf %415 : vector<8x32xf32>
    %417 = math.exp %416 : vector<8x32xf32>
    %cst_113 = arith.constant 1.000000e+00 : f32
    %418 = vector.broadcast %cst_113 : f32 to vector<8x32xf32>
    %419 = arith.addf %418, %417 : vector<8x32xf32>
    %420 = arith.divf %418, %419 : vector<8x32xf32>
    %421 = vector.extract_strided_slice %408 {offsets = [0, 32], sizes = [8, 32], strides = [1, 1]} : vector<8x96xf32> to vector<8x32xf32>
    %422 = vector.extract_strided_slice %412 {offsets = [0, 32], sizes = [8, 32], strides = [1, 1]} : vector<8x96xf32> to vector<8x32xf32>
    %423 = arith.addf %421, %422 : vector<8x32xf32>
    %424 = arith.negf %423 : vector<8x32xf32>
    %425 = math.exp %424 : vector<8x32xf32>
    %cst_114 = arith.constant 1.000000e+00 : f32
    %426 = vector.broadcast %cst_114 : f32 to vector<8x32xf32>
    %427 = arith.addf %426, %425 : vector<8x32xf32>
    %428 = arith.divf %426, %427 : vector<8x32xf32>
    %429 = vector.extract_strided_slice %408 {offsets = [0, 64], sizes = [8, 32], strides = [1, 1]} : vector<8x96xf32> to vector<8x32xf32>
    %430 = vector.extract_strided_slice %412 {offsets = [0, 64], sizes = [8, 32], strides = [1, 1]} : vector<8x96xf32> to vector<8x32xf32>
    %431 = arith.mulf %420, %430 : vector<8x32xf32>
    %432 = arith.addf %429, %431 : vector<8x32xf32>
    %433 = math.tanh %432 : vector<8x32xf32>
    %cst_115 = arith.constant 1.000000e+00 : f32
    %434 = vector.broadcast %cst_115 : f32 to vector<8x32xf32>
    %435 = arith.subf %434, %428 : vector<8x32xf32>
    %436 = arith.mulf %435, %433 : vector<8x32xf32>
    %437 = arith.mulf %428, %401 : vector<8x32xf32>
    %438 = arith.addf %436, %437 : vector<8x32xf32>
    %439 = vector.broadcast %410 : vector<8x1xf32> to vector<8x32xf32>
    %440 = arith.mulf %438, %439 : vector<8x32xf32>
    %441 = arith.index_cast %406 : i32 to index
    %c0_116 = arith.constant 0 : index
    %442 = vector.load %arg18[%441, %c0_116] : memref<64x32xf32, #tpu.memory_space<vmem>>, vector<8x32xf32>
    tpu.vector_store %arg18[%441, %c0_116], %440 {strides = array<i32>} : memref<64x32xf32, #tpu.memory_space<vmem>>, vector<8x32xf32>,
    %c3_i32_117 = arith.constant 3 : i32
    %c7_i32_118 = arith.constant 7 : i32
    %443 = arith.subi %c7_i32_118, %c3_i32_117 : i32
    %c8_i32_119 = arith.constant 8 : i32
    %444 = arith.muli %443, %c8_i32_119 : i32
    %445 = tpu.assume_multiple %444, 8 : i32
    %446 = arith.index_cast %445 : i32 to index
    %c0_120 = arith.constant 0 : index
    %447 = vector.load %arg16[%446, %c0_120] : memref<64x96xf32, #tpu.memory_space<vmem>>, vector<8x96xf32>
    %448 = arith.index_cast %445 : i32 to index
    %c0_121 = arith.constant 0 : index
    %449 = vector.load %arg1[%448, %c0_121] : memref<64x1xf32, #tpu.memory_space<vmem>>, vector<8x1xf32>
    %cst_122 = arith.constant dense<0.000000e+00> : vector<8x96xf32>
    %450 = tpu.matmul %440, %14, %cst_122 {dimension_numbers = #tpu.dot_dimension_numbers<[1], [0], [0], [1], [0, 0, 1, 1], [], []>} : vector<8x32xf32>, vector<32x96xf32>, vector<8x96xf32> -> vector<8x96xf32>
    %451 = arith.addf %450, %20 : vector<8x96xf32>
    %452 = vector.extract_strided_slice %447 {offsets = [0, 0], sizes = [8, 32], strides = [1, 1]} : vector<8x96xf32> to vector<8x32xf32>
    %453 = vector.extract_strided_slice %451 {offsets = [0, 0], sizes = [8, 32], strides = [1, 1]} : vector<8x96xf32> to vector<8x32xf32>
    %454 = arith.addf %452, %453 : vector<8x32xf32>
    %455 = arith.negf %454 : vector<8x32xf32>
    %456 = math.exp %455 : vector<8x32xf32>
    %cst_123 = arith.constant 1.000000e+00 : f32
    %457 = vector.broadcast %cst_123 : f32 to vector<8x32xf32>
    %458 = arith.addf %457, %456 : vector<8x32xf32>
    %459 = arith.divf %457, %458 : vector<8x32xf32>
    %460 = vector.extract_strided_slice %447 {offsets = [0, 32], sizes = [8, 32], strides = [1, 1]} : vector<8x96xf32> to vector<8x32xf32>
    %461 = vector.extract_strided_slice %451 {offsets = [0, 32], sizes = [8, 32], strides = [1, 1]} : vector<8x96xf32> to vector<8x32xf32>
    %462 = arith.addf %460, %461 : vector<8x32xf32>
    %463 = arith.negf %462 : vector<8x32xf32>
    %464 = math.exp %463 : vector<8x32xf32>
    %cst_124 = arith.constant 1.000000e+00 : f32
    %465 = vector.broadcast %cst_124 : f32 to vector<8x32xf32>
    %466 = arith.addf %465, %464 : vector<8x32xf32>
    %467 = arith.divf %465, %466 : vector<8x32xf32>
    %468 = vector.extract_strided_slice %447 {offsets = [0, 64], sizes = [8, 32], strides = [1, 1]} : vector<8x96xf32> to vector<8x32xf32>
    %469 = vector.extract_strided_slice %451 {offsets = [0, 64], sizes = [8, 32], strides = [1, 1]} : vector<8x96xf32> to vector<8x32xf32>
    %470 = arith.mulf %459, %469 : vector<8x32xf32>
    %471 = arith.addf %468, %470 : vector<8x32xf32>
    %472 = math.tanh %471 : vector<8x32xf32>
    %cst_125 = arith.constant 1.000000e+00 : f32
    %473 = vector.broadcast %cst_125 : f32 to vector<8x32xf32>
    %474 = arith.subf %473, %467 : vector<8x32xf32>
    %475 = arith.mulf %474, %472 : vector<8x32xf32>
    %476 = arith.mulf %467, %440 : vector<8x32xf32>
    %477 = arith.addf %475, %476 : vector<8x32xf32>
    %478 = vector.broadcast %449 : vector<8x1xf32> to vector<8x32xf32>
    %479 = arith.mulf %477, %478 : vector<8x32xf32>
    %480 = arith.index_cast %445 : i32 to index
    %c0_126 = arith.constant 0 : index
    %481 = vector.load %arg18[%480, %c0_126] : memref<64x32xf32, #tpu.memory_space<vmem>>, vector<8x32xf32>
    tpu.vector_store %arg18[%480, %c0_126], %479 {strides = array<i32>} : memref<64x32xf32, #tpu.memory_space<vmem>>, vector<8x32xf32>,
    %c4_i32_127 = arith.constant 4 : i32
    %c7_i32_128 = arith.constant 7 : i32
    %482 = arith.subi %c7_i32_128, %c4_i32_127 : i32
    %c8_i32_129 = arith.constant 8 : i32
    %483 = arith.muli %482, %c8_i32_129 : i32
    %484 = tpu.assume_multiple %483, 8 : i32
    %485 = arith.index_cast %484 : i32 to index
    %c0_130 = arith.constant 0 : index
    %486 = vector.load %arg16[%485, %c0_130] : memref<64x96xf32, #tpu.memory_space<vmem>>, vector<8x96xf32>
    %487 = arith.index_cast %484 : i32 to index
    %c0_131 = arith.constant 0 : index
    %488 = vector.load %arg1[%487, %c0_131] : memref<64x1xf32, #tpu.memory_space<vmem>>, vector<8x1xf32>
    %cst_132 = arith.constant dense<0.000000e+00> : vector<8x96xf32>
    %489 = tpu.matmul %479, %14, %cst_132 {dimension_numbers = #tpu.dot_dimension_numbers<[1], [0], [0], [1], [0, 0, 1, 1], [], []>} : vector<8x32xf32>, vector<32x96xf32>, vector<8x96xf32> -> vector<8x96xf32>
    %490 = arith.addf %489, %20 : vector<8x96xf32>
    %491 = vector.extract_strided_slice %486 {offsets = [0, 0], sizes = [8, 32], strides = [1, 1]} : vector<8x96xf32> to vector<8x32xf32>
    %492 = vector.extract_strided_slice %490 {offsets = [0, 0], sizes = [8, 32], strides = [1, 1]} : vector<8x96xf32> to vector<8x32xf32>
    %493 = arith.addf %491, %492 : vector<8x32xf32>
    %494 = arith.negf %493 : vector<8x32xf32>
    %495 = math.exp %494 : vector<8x32xf32>
    %cst_133 = arith.constant 1.000000e+00 : f32
    %496 = vector.broadcast %cst_133 : f32 to vector<8x32xf32>
    %497 = arith.addf %496, %495 : vector<8x32xf32>
    %498 = arith.divf %496, %497 : vector<8x32xf32>
    %499 = vector.extract_strided_slice %486 {offsets = [0, 32], sizes = [8, 32], strides = [1, 1]} : vector<8x96xf32> to vector<8x32xf32>
    %500 = vector.extract_strided_slice %490 {offsets = [0, 32], sizes = [8, 32], strides = [1, 1]} : vector<8x96xf32> to vector<8x32xf32>
    %501 = arith.addf %499, %500 : vector<8x32xf32>
    %502 = arith.negf %501 : vector<8x32xf32>
    %503 = math.exp %502 : vector<8x32xf32>
    %cst_134 = arith.constant 1.000000e+00 : f32
    %504 = vector.broadcast %cst_134 : f32 to vector<8x32xf32>
    %505 = arith.addf %504, %503 : vector<8x32xf32>
    %506 = arith.divf %504, %505 : vector<8x32xf32>
    %507 = vector.extract_strided_slice %486 {offsets = [0, 64], sizes = [8, 32], strides = [1, 1]} : vector<8x96xf32> to vector<8x32xf32>
    %508 = vector.extract_strided_slice %490 {offsets = [0, 64], sizes = [8, 32], strides = [1, 1]} : vector<8x96xf32> to vector<8x32xf32>
    %509 = arith.mulf %498, %508 : vector<8x32xf32>
    %510 = arith.addf %507, %509 : vector<8x32xf32>
    %511 = math.tanh %510 : vector<8x32xf32>
    %cst_135 = arith.constant 1.000000e+00 : f32
    %512 = vector.broadcast %cst_135 : f32 to vector<8x32xf32>
    %513 = arith.subf %512, %506 : vector<8x32xf32>
    %514 = arith.mulf %513, %511 : vector<8x32xf32>
    %515 = arith.mulf %506, %479 : vector<8x32xf32>
    %516 = arith.addf %514, %515 : vector<8x32xf32>
    %517 = vector.broadcast %488 : vector<8x1xf32> to vector<8x32xf32>
    %518 = arith.mulf %516, %517 : vector<8x32xf32>
    %519 = arith.index_cast %484 : i32 to index
    %c0_136 = arith.constant 0 : index
    %520 = vector.load %arg18[%519, %c0_136] : memref<64x32xf32, #tpu.memory_space<vmem>>, vector<8x32xf32>
    tpu.vector_store %arg18[%519, %c0_136], %518 {strides = array<i32>} : memref<64x32xf32, #tpu.memory_space<vmem>>, vector<8x32xf32>,
    %c5_i32_137 = arith.constant 5 : i32
    %c7_i32_138 = arith.constant 7 : i32
    %521 = arith.subi %c7_i32_138, %c5_i32_137 : i32
    %c8_i32_139 = arith.constant 8 : i32
    %522 = arith.muli %521, %c8_i32_139 : i32
    %523 = tpu.assume_multiple %522, 8 : i32
    %524 = arith.index_cast %523 : i32 to index
    %c0_140 = arith.constant 0 : index
    %525 = vector.load %arg16[%524, %c0_140] : memref<64x96xf32, #tpu.memory_space<vmem>>, vector<8x96xf32>
    %526 = arith.index_cast %523 : i32 to index
    %c0_141 = arith.constant 0 : index
    %527 = vector.load %arg1[%526, %c0_141] : memref<64x1xf32, #tpu.memory_space<vmem>>, vector<8x1xf32>
    %cst_142 = arith.constant dense<0.000000e+00> : vector<8x96xf32>
    %528 = tpu.matmul %518, %14, %cst_142 {dimension_numbers = #tpu.dot_dimension_numbers<[1], [0], [0], [1], [0, 0, 1, 1], [], []>} : vector<8x32xf32>, vector<32x96xf32>, vector<8x96xf32> -> vector<8x96xf32>
    %529 = arith.addf %528, %20 : vector<8x96xf32>
    %530 = vector.extract_strided_slice %525 {offsets = [0, 0], sizes = [8, 32], strides = [1, 1]} : vector<8x96xf32> to vector<8x32xf32>
    %531 = vector.extract_strided_slice %529 {offsets = [0, 0], sizes = [8, 32], strides = [1, 1]} : vector<8x96xf32> to vector<8x32xf32>
    %532 = arith.addf %530, %531 : vector<8x32xf32>
    %533 = arith.negf %532 : vector<8x32xf32>
    %534 = math.exp %533 : vector<8x32xf32>
    %cst_143 = arith.constant 1.000000e+00 : f32
    %535 = vector.broadcast %cst_143 : f32 to vector<8x32xf32>
    %536 = arith.addf %535, %534 : vector<8x32xf32>
    %537 = arith.divf %535, %536 : vector<8x32xf32>
    %538 = vector.extract_strided_slice %525 {offsets = [0, 32], sizes = [8, 32], strides = [1, 1]} : vector<8x96xf32> to vector<8x32xf32>
    %539 = vector.extract_strided_slice %529 {offsets = [0, 32], sizes = [8, 32], strides = [1, 1]} : vector<8x96xf32> to vector<8x32xf32>
    %540 = arith.addf %538, %539 : vector<8x32xf32>
    %541 = arith.negf %540 : vector<8x32xf32>
    %542 = math.exp %541 : vector<8x32xf32>
    %cst_144 = arith.constant 1.000000e+00 : f32
    %543 = vector.broadcast %cst_144 : f32 to vector<8x32xf32>
    %544 = arith.addf %543, %542 : vector<8x32xf32>
    %545 = arith.divf %543, %544 : vector<8x32xf32>
    %546 = vector.extract_strided_slice %525 {offsets = [0, 64], sizes = [8, 32], strides = [1, 1]} : vector<8x96xf32> to vector<8x32xf32>
    %547 = vector.extract_strided_slice %529 {offsets = [0, 64], sizes = [8, 32], strides = [1, 1]} : vector<8x96xf32> to vector<8x32xf32>
    %548 = arith.mulf %537, %547 : vector<8x32xf32>
    %549 = arith.addf %546, %548 : vector<8x32xf32>
    %550 = math.tanh %549 : vector<8x32xf32>
    %cst_145 = arith.constant 1.000000e+00 : f32
    %551 = vector.broadcast %cst_145 : f32 to vector<8x32xf32>
    %552 = arith.subf %551, %545 : vector<8x32xf32>
    %553 = arith.mulf %552, %550 : vector<8x32xf32>
    %554 = arith.mulf %545, %518 : vector<8x32xf32>
    %555 = arith.addf %553, %554 : vector<8x32xf32>
    %556 = vector.broadcast %527 : vector<8x1xf32> to vector<8x32xf32>
    %557 = arith.mulf %555, %556 : vector<8x32xf32>
    %558 = arith.index_cast %523 : i32 to index
    %c0_146 = arith.constant 0 : index
    %559 = vector.load %arg18[%558, %c0_146] : memref<64x32xf32, #tpu.memory_space<vmem>>, vector<8x32xf32>
    tpu.vector_store %arg18[%558, %c0_146], %557 {strides = array<i32>} : memref<64x32xf32, #tpu.memory_space<vmem>>, vector<8x32xf32>,
    %c6_i32_147 = arith.constant 6 : i32
    %c7_i32_148 = arith.constant 7 : i32
    %560 = arith.subi %c7_i32_148, %c6_i32_147 : i32
    %c8_i32_149 = arith.constant 8 : i32
    %561 = arith.muli %560, %c8_i32_149 : i32
    %562 = tpu.assume_multiple %561, 8 : i32
    %563 = arith.index_cast %562 : i32 to index
    %c0_150 = arith.constant 0 : index
    %564 = vector.load %arg16[%563, %c0_150] : memref<64x96xf32, #tpu.memory_space<vmem>>, vector<8x96xf32>
    %565 = arith.index_cast %562 : i32 to index
    %c0_151 = arith.constant 0 : index
    %566 = vector.load %arg1[%565, %c0_151] : memref<64x1xf32, #tpu.memory_space<vmem>>, vector<8x1xf32>
    %cst_152 = arith.constant dense<0.000000e+00> : vector<8x96xf32>
    %567 = tpu.matmul %557, %14, %cst_152 {dimension_numbers = #tpu.dot_dimension_numbers<[1], [0], [0], [1], [0, 0, 1, 1], [], []>} : vector<8x32xf32>, vector<32x96xf32>, vector<8x96xf32> -> vector<8x96xf32>
    %568 = arith.addf %567, %20 : vector<8x96xf32>
    %569 = vector.extract_strided_slice %564 {offsets = [0, 0], sizes = [8, 32], strides = [1, 1]} : vector<8x96xf32> to vector<8x32xf32>
    %570 = vector.extract_strided_slice %568 {offsets = [0, 0], sizes = [8, 32], strides = [1, 1]} : vector<8x96xf32> to vector<8x32xf32>
    %571 = arith.addf %569, %570 : vector<8x32xf32>
    %572 = arith.negf %571 : vector<8x32xf32>
    %573 = math.exp %572 : vector<8x32xf32>
    %cst_153 = arith.constant 1.000000e+00 : f32
    %574 = vector.broadcast %cst_153 : f32 to vector<8x32xf32>
    %575 = arith.addf %574, %573 : vector<8x32xf32>
    %576 = arith.divf %574, %575 : vector<8x32xf32>
    %577 = vector.extract_strided_slice %564 {offsets = [0, 32], sizes = [8, 32], strides = [1, 1]} : vector<8x96xf32> to vector<8x32xf32>
    %578 = vector.extract_strided_slice %568 {offsets = [0, 32], sizes = [8, 32], strides = [1, 1]} : vector<8x96xf32> to vector<8x32xf32>
    %579 = arith.addf %577, %578 : vector<8x32xf32>
    %580 = arith.negf %579 : vector<8x32xf32>
    %581 = math.exp %580 : vector<8x32xf32>
    %cst_154 = arith.constant 1.000000e+00 : f32
    %582 = vector.broadcast %cst_154 : f32 to vector<8x32xf32>
    %583 = arith.addf %582, %581 : vector<8x32xf32>
    %584 = arith.divf %582, %583 : vector<8x32xf32>
    %585 = vector.extract_strided_slice %564 {offsets = [0, 64], sizes = [8, 32], strides = [1, 1]} : vector<8x96xf32> to vector<8x32xf32>
    %586 = vector.extract_strided_slice %568 {offsets = [0, 64], sizes = [8, 32], strides = [1, 1]} : vector<8x96xf32> to vector<8x32xf32>
    %587 = arith.mulf %576, %586 : vector<8x32xf32>
    %588 = arith.addf %585, %587 : vector<8x32xf32>
    %589 = math.tanh %588 : vector<8x32xf32>
    %cst_155 = arith.constant 1.000000e+00 : f32
    %590 = vector.broadcast %cst_155 : f32 to vector<8x32xf32>
    %591 = arith.subf %590, %584 : vector<8x32xf32>
    %592 = arith.mulf %591, %589 : vector<8x32xf32>
    %593 = arith.mulf %584, %557 : vector<8x32xf32>
    %594 = arith.addf %592, %593 : vector<8x32xf32>
    %595 = vector.broadcast %566 : vector<8x1xf32> to vector<8x32xf32>
    %596 = arith.mulf %594, %595 : vector<8x32xf32>
    %597 = arith.index_cast %562 : i32 to index
    %c0_156 = arith.constant 0 : index
    %598 = vector.load %arg18[%597, %c0_156] : memref<64x32xf32, #tpu.memory_space<vmem>>, vector<8x32xf32>
    tpu.vector_store %arg18[%597, %c0_156], %596 {strides = array<i32>} : memref<64x32xf32, #tpu.memory_space<vmem>>, vector<8x32xf32>,
    %c7_i32_157 = arith.constant 7 : i32
    %c7_i32_158 = arith.constant 7 : i32
    %599 = arith.subi %c7_i32_158, %c7_i32_157 : i32
    %c8_i32_159 = arith.constant 8 : i32
    %600 = arith.muli %599, %c8_i32_159 : i32
    %601 = tpu.assume_multiple %600, 8 : i32
    %602 = arith.index_cast %601 : i32 to index
    %c0_160 = arith.constant 0 : index
    %603 = vector.load %arg16[%602, %c0_160] : memref<64x96xf32, #tpu.memory_space<vmem>>, vector<8x96xf32>
    %604 = arith.index_cast %601 : i32 to index
    %c0_161 = arith.constant 0 : index
    %605 = vector.load %arg1[%604, %c0_161] : memref<64x1xf32, #tpu.memory_space<vmem>>, vector<8x1xf32>
    %cst_162 = arith.constant dense<0.000000e+00> : vector<8x96xf32>
    %606 = tpu.matmul %596, %14, %cst_162 {dimension_numbers = #tpu.dot_dimension_numbers<[1], [0], [0], [1], [0, 0, 1, 1], [], []>} : vector<8x32xf32>, vector<32x96xf32>, vector<8x96xf32> -> vector<8x96xf32>
    %607 = arith.addf %606, %20 : vector<8x96xf32>
    %608 = vector.extract_strided_slice %603 {offsets = [0, 0], sizes = [8, 32], strides = [1, 1]} : vector<8x96xf32> to vector<8x32xf32>
    %609 = vector.extract_strided_slice %607 {offsets = [0, 0], sizes = [8, 32], strides = [1, 1]} : vector<8x96xf32> to vector<8x32xf32>
    %610 = arith.addf %608, %609 : vector<8x32xf32>
    %611 = arith.negf %610 : vector<8x32xf32>
    %612 = math.exp %611 : vector<8x32xf32>
    %cst_163 = arith.constant 1.000000e+00 : f32
    %613 = vector.broadcast %cst_163 : f32 to vector<8x32xf32>
    %614 = arith.addf %613, %612 : vector<8x32xf32>
    %615 = arith.divf %613, %614 : vector<8x32xf32>
    %616 = vector.extract_strided_slice %603 {offsets = [0, 32], sizes = [8, 32], strides = [1, 1]} : vector<8x96xf32> to vector<8x32xf32>
    %617 = vector.extract_strided_slice %607 {offsets = [0, 32], sizes = [8, 32], strides = [1, 1]} : vector<8x96xf32> to vector<8x32xf32>
    %618 = arith.addf %616, %617 : vector<8x32xf32>
    %619 = arith.negf %618 : vector<8x32xf32>
    %620 = math.exp %619 : vector<8x32xf32>
    %cst_164 = arith.constant 1.000000e+00 : f32
    %621 = vector.broadcast %cst_164 : f32 to vector<8x32xf32>
    %622 = arith.addf %621, %620 : vector<8x32xf32>
    %623 = arith.divf %621, %622 : vector<8x32xf32>
    %624 = vector.extract_strided_slice %603 {offsets = [0, 64], sizes = [8, 32], strides = [1, 1]} : vector<8x96xf32> to vector<8x32xf32>
    %625 = vector.extract_strided_slice %607 {offsets = [0, 64], sizes = [8, 32], strides = [1, 1]} : vector<8x96xf32> to vector<8x32xf32>
    %626 = arith.mulf %615, %625 : vector<8x32xf32>
    %627 = arith.addf %624, %626 : vector<8x32xf32>
    %628 = math.tanh %627 : vector<8x32xf32>
    %cst_165 = arith.constant 1.000000e+00 : f32
    %629 = vector.broadcast %cst_165 : f32 to vector<8x32xf32>
    %630 = arith.subf %629, %623 : vector<8x32xf32>
    %631 = arith.mulf %630, %628 : vector<8x32xf32>
    %632 = arith.mulf %623, %596 : vector<8x32xf32>
    %633 = arith.addf %631, %632 : vector<8x32xf32>
    %634 = vector.broadcast %605 : vector<8x1xf32> to vector<8x32xf32>
    %635 = arith.mulf %633, %634 : vector<8x32xf32>
    %636 = arith.index_cast %601 : i32 to index
    %c0_166 = arith.constant 0 : index
    %637 = vector.load %arg18[%636, %c0_166] : memref<64x32xf32, #tpu.memory_space<vmem>>, vector<8x32xf32>
    tpu.vector_store %arg18[%636, %c0_166], %635 {strides = array<i32>} : memref<64x32xf32, #tpu.memory_space<vmem>>, vector<8x32xf32>,
    %c8_i32_167 = arith.constant 8 : i32
    %c0_168 = arith.constant 0 : index
    %c0_169 = arith.constant 0 : index
    %638 = vector.load %arg17[%c0_168, %c0_169] : memref<64x32xf32, #tpu.memory_space<vmem>>, vector<64x32xf32>
    %c0_170 = arith.constant 0 : index
    %c0_171 = arith.constant 0 : index
    %639 = vector.load %arg18[%c0_170, %c0_171] : memref<64x32xf32, #tpu.memory_space<vmem>>, vector<64x32xf32>
    %c0_172 = arith.constant 0 : index
    %c0_173 = arith.constant 0 : index
    %640 = vector.load %arg10[%c0_172, %c0_173] : memref<32x64xf32, #tpu.memory_space<vmem>>, vector<32x64xf32>
    %cst_174 = arith.constant dense<0.000000e+00> : vector<64x64xf32>
    %641 = tpu.matmul %638, %640, %cst_174 {dimension_numbers = #tpu.dot_dimension_numbers<[1], [0], [0], [1], [0, 0, 1, 1], [], []>} : vector<64x32xf32>, vector<32x64xf32>, vector<64x64xf32> -> vector<64x64xf32>
    %c0_175 = arith.constant 0 : index
    %c0_176 = arith.constant 0 : index
    %642 = vector.load %arg11[%c0_175, %c0_176] : memref<32x64xf32, #tpu.memory_space<vmem>>, vector<32x64xf32>
    %cst_177 = arith.constant dense<0.000000e+00> : vector<64x64xf32>
    %643 = tpu.matmul %639, %642, %cst_177 {dimension_numbers = #tpu.dot_dimension_numbers<[1], [0], [0], [1], [0, 0, 1, 1], [], []>} : vector<64x32xf32>, vector<32x64xf32>, vector<64x64xf32> -> vector<64x64xf32>
    %644 = arith.addf %641, %643 : vector<64x64xf32>
    %c0_178 = arith.constant 0 : index
    %c0_179 = arith.constant 0 : index
    %645 = vector.load %arg12[%c0_178, %c0_179] : memref<1x64xf32, #tpu.memory_space<vmem>>, vector<1x64xf32>
    %646 = vector.broadcast %645 : vector<1x64xf32> to vector<64x64xf32>
    %647 = arith.addf %644, %646 : vector<64x64xf32>
    %648 = math.tanh %647 : vector<64x64xf32>
    %c0_180 = arith.constant 0 : index
    %c0_181 = arith.constant 0 : index
    %649 = vector.load %arg13[%c0_180, %c0_181] : memref<1x64xf32, #tpu.memory_space<vmem>>, vector<1x64xf32>
    %650 = vector.broadcast %649 : vector<1x64xf32> to vector<64x64xf32>
    %651 = arith.mulf %648, %650 : vector<64x64xf32>
    %cst_182 = arith.constant dense<0.000000e+00> : vector<64xf32>
    %652 = vector.multi_reduction <add>, %651, %cst_182 [1] : vector<64x64xf32> to vector<64xf32>
    %653 = vector.shape_cast %652 : vector<64xf32> to vector<64x1xf32>
    %654 = math.exp %653 : vector<64x1xf32>
    %c0_183 = arith.constant 0 : index
    %c0_184 = arith.constant 0 : index
    %655 = vector.load %arg1[%c0_183, %c0_184] : memref<64x1xf32, #tpu.memory_space<vmem>>, vector<64x1xf32>
    %656 = arith.mulf %654, %655 : vector<64x1xf32>
    %657 = vector.broadcast %656 : vector<64x1xf32> to vector<64x32xf32>
    %658 = arith.mulf %657, %638 : vector<64x32xf32>
    %659 = vector.shape_cast %658 : vector<64x32xf32> to vector<8x8x32xf32>
    %cst_185 = arith.constant dense<0.000000e+00> : vector<8x32xf32>
    %660 = vector.multi_reduction <add>, %659, %cst_185 [0] : vector<8x8x32xf32> to vector<8x32xf32>
    %661 = vector.broadcast %656 : vector<64x1xf32> to vector<64x32xf32>
    %662 = arith.mulf %661, %639 : vector<64x32xf32>
    %663 = vector.shape_cast %662 : vector<64x32xf32> to vector<8x8x32xf32>
    %cst_186 = arith.constant dense<0.000000e+00> : vector<8x32xf32>
    %664 = vector.multi_reduction <add>, %663, %cst_186 [0] : vector<8x8x32xf32> to vector<8x32xf32>
    %665 = vector.shape_cast %656 : vector<64x1xf32> to vector<8x8x1xf32>
    %cst_187 = arith.constant dense<0.000000e+00> : vector<8x1xf32>
    %666 = vector.multi_reduction <add>, %665, %cst_187 [0] : vector<8x8x1xf32> to vector<8x1xf32>
    %cst_188 = arith.constant 9.99999974E-5 : f32
    %667 = vector.broadcast %cst_188 : f32 to vector<8x1xf32>
    %668 = arith.addf %666, %667 : vector<8x1xf32>
    %cst_189 = arith.constant 1.000000e+00 : f32
    %669 = vector.broadcast %cst_189 : f32 to vector<8x1xf32>
    %670 = arith.divf %669, %668 : vector<8x1xf32>
    %671 = vector.broadcast %670 : vector<8x1xf32> to vector<8x32xf32>
    %672 = arith.mulf %660, %671 : vector<8x32xf32>
    %c0_190 = arith.constant 0 : index
    %c0_191 = arith.constant 0 : index
    %c0_192 = arith.constant 0 : index
    %673 = vector.load %arg14[%c0_190, %c0_191, %c0_192] : memref<2x8x32xf32, #tpu.memory_space<vmem>>, vector<1x8x32xf32>
    %674 = vector.shape_cast %673 : vector<1x8x32xf32> to vector<8x32xf32>
    %675 = vector.shape_cast %672 : vector<8x32xf32> to vector<1x8x32xf32>
    tpu.vector_store %arg14[%c0_190, %c0_191, %c0_192], %675 {strides = array<i32>} : memref<2x8x32xf32, #tpu.memory_space<vmem>>, vector<1x8x32xf32>,
    %676 = vector.broadcast %670 : vector<8x1xf32> to vector<8x32xf32>
    %677 = arith.mulf %664, %676 : vector<8x32xf32>
    %c1 = arith.constant 1 : index
    %c0_193 = arith.constant 0 : index
    %c0_194 = arith.constant 0 : index
    %678 = vector.load %arg14[%c1, %c0_193, %c0_194] : memref<2x8x32xf32, #tpu.memory_space<vmem>>, vector<1x8x32xf32>
    %679 = vector.shape_cast %678 : vector<1x8x32xf32> to vector<8x32xf32>
    %680 = vector.shape_cast %677 : vector<8x32xf32> to vector<1x8x32xf32>
    tpu.vector_store %arg14[%c1, %c0_193, %c0_194], %680 {strides = array<i32>} : memref<2x8x32xf32, #tpu.memory_space<vmem>>, vector<1x8x32xf32>,
    return
  }
}

</mosaic_0001>

<bundles_post_ra>
// kernel: tpu_custom_call.1
= control target key start
LH: loop header
LB: loop body
LE: loop exit
PB: predicated region body
PF: predicated region fallthrough
CT: control target
= control target key end

     0   :  { %19 = vsyncpa [#allocation7], 0  ;;  %s4162_s0 = inlined_call_operand.vmem [shape: f32[64,16], index: 0, kind: input, shape index: {}]   ;;  %s4163_s1 = inlined_call_operand.vmem [shape: f32[64,1], index: 1, kind: input, shape index: {}]   ;;  %s4164_s2 = inlined_call_operand.vmem [shape: f32[16,96], index: 2, kind: input, shape index: {}]   ;;  %s4165_s3 = inlined_call_operand.vmem [shape: f32[32,96], index: 3, kind: input, shape index: {}]   ;;  %s4166_s4 = inlined_call_operand.hbm [shape: f32[1,96], index: 4, kind: input, shape index: {}]   ;;  %s4167_s5 = inlined_call_operand.vmem [shape: f32[1,96], index: 5, kind: input, shape index: {}]   ;;  %s4168_s6 = inlined_call_operand.vmem [shape: f32[16,96], index: 6, kind: input, shape index: {}]   ;;  %s4169_s7 = inlined_call_operand.vmem [shape: f32[32,96], index: 7, kind: input, shape index: {}]   ;;  %s4170_s8 = inlined_call_operand.vmem [shape: f32[1,96], index: 8, kind: input, shape index: {}]   ;;  %s4171_s9 = inlined_call_operand.vmem [shape: f32[1,96], index: 9, kind: input, shape index: {}]   ;;  %s4172_s10 = inlined_call_operand.vmem [shape: f32[32,64], index: 10, kind: input, shape index: {}]   ;;  %s4173_s11 = inlined_call_operand.vmem [shape: f32[32,64], index: 11, kind: input, shape index: {}]   ;;  %s4174_s12 = inlined_call_operand.vmem [shape: f32[1,64], index: 12, kind: input, shape index: {}]   ;;  %s4175_s13 = inlined_call_operand.vmem [shape: f32[1,64], index: 13, kind: input, shape index: {}]   ;;  %s4176_s14 = inlined_call_operand.hbm [shape: f32[2,8,32], index: 14, kind: output, shape index: {}]  }
   0x1   :  { %20 = vsyncpa [#allocation8], 0  ;;  %s3453_s29 = smov [#allocation6]   ;;  %s3405_s17 = scalar_lea.hbm %s4166_s4, 16 }
   0x2   :  { %s35_s30 = sshll.u32 %s3453_s29, 4  ;;  %p3406_p0 = scmp.ne.s32.totalorder %s4166_s4, %s3405_s17  ;;  %s36_s30 = int_to_ptr.vmem [resolvable:$true] %s35_s30 }
   0x3   :  { %p3409_p1 = scmp.lt.u32.totalorder %s3405_s17, %s4166_s4 }
   0x5   :  { %p3411_p2 = pnand %p3409_p1, %p3406_p0 }
   0x7   :  { %3414 = shalt.err (!%p3411_p2)
}
   0x8   :  { %s3415_s22 = scalar_lea.vmem %s36_s30, 16  ;;  %s3419_s23 = scalar_lea.vmem %s36_s30, 32 }
   0x9   :  { %p3416_p3 = scmp.ne.s32.totalorder %s36_s30, %s3415_s22  ;;  %p3420_p4 = scmp.lt.s32.totalorder %s36_s30, %s36_s30 }
   0xa   :  { %p3421_p5 = scmp.lt.s32.totalorder %s3419_s23, %s3415_s22 }
   0xc   :  { %p3422_p6 = por %p3421_p5, %p3420_p4 }
   0xe   :  { %p3423_p7 = pnand %p3422_p6, %p3416_p3 }
  0x10   :  { %3426 = shalt.err (!%p3423_p7)
}
  0x11   :  { %38 = dma.hbm_to_vmem [thread:$0]  %s4166_s4, 16, %s36_s30, [#allocation7]  }
  0x12   :  { %3449 = dma.done.wait [#allocation7], 16  }
  0x13   :  { %3450 = vsyncadd [#allocation7], 4294967280  ;;  %vm77_vm0 = vcmask 130048   ;;  %v68_v0 = vld [vmem:[%s4164_s2] sm:$0xff]  ;;  %v69_v1 = vld [vmem:[%s4164_s2 + $0x8] sm:$0xff]  ;;  %v3454_v8 = vmov 0.0|0.0  }
  0x14   :  { %v60_v2 = vld [vmem:[%s4162_s0] sm:$0xff]  ;;  %v3134_v3 = vpack.c.bf16 %v69_v1, %v68_v0  ;;  %v339_v5 = vld [vmem:[%s4165_s3 + $0x8] sm:$0xff]  ;;  %v3578_v9 = vld [vmem:[%s4162_s0 + $0x10] sm:$0xff]  ;;  %vm3455_vm1 = vmmov 0   ;;  %v3456_v18 = vmov 0.0   ;;  %vm207_vm2 = vcmask 785408  }
  0x15   :  { %2890 = vmatprep.mubr.msk.f32.mxu0 %vm77_vm0, %v60_v2  ;;  %v338_v4 = vld [vmem:[%s4165_s3] sm:$0xff]  ;;  %2906 = vmatprep.mubr.msk.f32.mxu1 %vm77_vm0, %v60_v2  ;;  %v3570_v6 = vld [vmem:[%s4162_s0 + $0x8] sm:$0xff]  ;;  %v340_v10 = vld [vmem:[%s4165_s3 + $0x10] sm:$0xff]  ;;  %v3457_v32 = vmov 0   ;;  %s3458_s20 = smov 64   ;;  %s3459_s25 = smov 96  }
  0x16   :  { %3135 = vmatprep.subr.bf16.mxu0 %v3134_v3  ;;  %v3572_v7 = vpack.c.bf16 %v339_v5, %v338_v4  ;;  %v341_v11 = vld [vmem:[%s4165_s3 + $0x18] sm:$0xff]  ;;  %v3601_v14 = vld [vmem:[%s4162_s0 + $0x20] sm:$0xff]  ;;  %v3611_v15 = vld [vmem:[%s4162_s0 + $0x28] sm:$0xff]  ;;  %3272 = vset.pattern.permute.xlu1 %v3457_v32  ;;  %vm362_vm3 = vcmask 261120   ;;  %vm2491_vm4 = vcmask 523264   ;;  %vm2634_vm5 = vcmask 7168  }
  0x17   :  { %3137 = vmatpush3.bf16.msra.mxu0 %v3134_v3  ;;  %v3594_v12 = vld [vmem:[%s4162_s0 + $0x18] sm:$0xff]  ;;  %v3596_v13 = vpack.c.bf16 %v341_v11, %v340_v10  ;;  %v3617_v16 = vld [vmem:[%s4162_s0 + $0x30] sm:$0xff]  ;;  %v2680_v19 = vld [vmem:[#allocation6] ss:$0 sm:$0xff]  ;;  %3273 = vset.pattern.permute.xlu0 %v3457_v32 }
  0x18   :  { %3142 = vmatprep.subr.bf16.mxu0 %v3454_v8  ;;  %v3627_v17 = vld [vmem:[%s4162_s0 + $0x38] sm:$0xff]  ;;  %v361_v29 = vld [vmem:[%s4163_s1] sm:$0xff]  ;;  %v217_v53 = vld [vmem:[%s4168_s6 + $0x8] sm:$0xff] }
  0x19   :  { %464 = vperm.xlu1 %3272, %v361_v29   ;;  %v3652_v38 = vld [vmem:[%s4167_s5] ss:$0 sm:$0xff] }
  0x1a   :  { %2891 = vmatmul.mubr.msk.f32.vlgmr.msra.gmra.mrb[0].mxu0 %vm77_vm0, %v3570_v6  ;;  %v216_v52 = vld [vmem:[%s4168_s6] sm:$0xff] }
  0x1b   :  { %3144 = vmatpush3.bf16.msra.mxu0 %v3572_v7  ;;  %2893 = vmatprep.mubr.msk.f32.mxu0 %vm77_vm0, %v3578_v9  ;;  %v3138_v54 = vpack.c.bf16 %v217_v53, %v216_v52  ;;  %v2689_v63 = vld [vmem:[%s4170_s8] ss:$0 sm:$0xff]  ;;  %v3731_v53 = vld [vmem:[%s4163_s1 + $0x10] sm:$0xff] }
  0x1c   :  { %3145 = vmatprep.subr.bf16.mxu0 %v3454_v8 }
  0x1d   :  { %3139 = vmatprep.subr.bf16.mxu1 %v3138_v54 }
  0x1e   :  { %2894 = vmatmul.mubr.msk.f32.gmra.mrb[2].mxu0 %vm77_vm0, %v3594_v12  ;;  %3141 = vmatpush3.bf16.msra.mxu1 %v3138_v54 }
  0x1f   :  { %2896 = vmatprep.mubr.msk.f32.mxu0 %vm77_vm0, %v3601_v14  ;;  %3147 = vmatpush3.bf16.msra.mxu0 %v3596_v13 }
  0x20   :  { %3154 = vmatprep.subr.bf16.mxu0 %v3454_v8  ;;  %3148 = vmatprep.subr.bf16.mxu1 %v3454_v8 }
  0x21   :  { %2907 = vmatmul.mubr.msk.f32.vlgmr.msra.gmra.mrb[0].mxu1 %vm77_vm0, %v3570_v6 }
  0x22   :  { %2897 = vmatmul.mubr.msk.f32.gmra.mrb[4].mxu0 %vm77_vm0, %v3611_v15  ;;  %3150 = vmatpush3.bf16.msra.mxu1 %v3572_v7 }
  0x23   :  { %2899 = vmatprep.mubr.msk.f32.mxu0 %vm77_vm0, %v3617_v16  ;;  %2909 = vmatprep.mubr.msk.f32.mxu1 %vm77_vm0, %v3578_v9 }
  0x24   :  { %3151 = vmatprep.subr.bf16.mxu1 %v3454_v8 }
  0x25   :  { %2910 = vmatmul.mubr.msk.f32.gmra.mrb[2].mxu1 %vm77_vm0, %v3594_v12 }
  0x26   :  { %2900 = vmatmul.mubr.msk.f32.gmra.mrb[6].mxu0 %vm77_vm0, %v3627_v17  ;;  %2912 = vmatprep.mubr.msk.f32.mxu1 %vm77_vm0, %v3601_v14 }
  0x27   :  { %2926 = vmatprep.mubr.msk.f32.mxu0 %vm3455_vm1, %v3456_v18  ;;  %3153 = vmatpush3.bf16.msra.mxu1 %v3596_v13 }
  0x28   :  { %3160 = vmatprep.subr.bf16.mxu1 %v3454_v8 }
  0x29   :  { %2913 = vmatmul.mubr.msk.f32.gmra.mrb[4].mxu1 %vm77_vm0, %v3611_v15 }
  0x2a   :  { %2927 = vmatmul.mubr.f32.vlgmr.msra.gmra.mrb[8].mxu0 %v3456_v18  ;;  %2915 = vmatprep.mubr.msk.f32.mxu1 %vm77_vm0, %v3617_v16 }
  0x2b   :  { %3156 = vmatpush3.bf16.msra.mxu0 %v3572_v7  ;;  %2948 = vmatprep.mubr.msk.f32.mxu0 %vm3455_vm1, %v3456_v18 }
  0x2c   :  { %3157 = vmatprep.subr.bf16.mxu0 %v3454_v8 }
  0x2d   :  { %2916 = vmatmul.mubr.msk.f32.gmra.mrb[6].mxu1 %vm77_vm0, %v3627_v17 }
  0x2e   :  { %2937 = vmatprep.mubr.msk.f32.mxu1 %vm3455_vm1, %v3456_v18 }
  0x2f   :  { %3159 = vmatpush3.bf16.msra.mxu0 %v3596_v13 }
  0x30   :  { %3166 = vmatprep.subr.bf16.mxu0 %v3454_v8 }
  0x98   :  { %v465_v56 = vpop.permute.xlu1 %464 }
  0xed   :  { %v2892_v20 = vpop.f32.mrb[0].mxu0 }
  0xee   :  { %v174_v21 = vadd.f32 %v2892_v20, %v2680_v19  ;;  %v168_v22 = vpop.f32.mrb[1].mxu0 }
  0xef   :  { %v169_v23 = vadd.f32 %v2680_v19, %v168_v22 }
  0xf0   :  { %209 = vst.msk [vmem:[#allocation2 + $0x8] sm:$0xff] %vm207_vm2, %v174_v21 }
  0xf1   :  { %208 = vst.msk [vmem:[#allocation2] sm:$0xff] %vm207_vm2, %v169_v23  ;;  %v2895_v24 = vpop.f32.mrb[2].mxu0 }
  0xf2   :  { %v184_v25 = vadd.f32 %v2895_v24, %v2680_v19  ;;  %v178_v26 = vpop.f32.mrb[3].mxu0  ;;  %v3712_v24 = vld [vmem:[%s4163_s1 + $0x8] sm:$0xff] }
  0xf3   :  { %v179_v27 = vadd.f32 %v2680_v19, %v178_v26 }
  0xf4   :  { %211 = vst.msk [vmem:[#allocation2 + $0x18] sm:$0xff] %vm207_vm2, %v184_v25  ;;  %v2908_v0 = vpop.f32.mrb[0].mxu1 }
  0xf5   :  { %210 = vst.msk [vmem:[#allocation2 + $0x10] sm:$0xff] %vm207_vm2, %v179_v27  ;;  %v2898_v28 = vpop.f32.mrb[4].mxu0  ;;  %v297_v1 = vadd.f32 %v2908_v0, %v2689_v63  ;;  %v291_v2 = vpop.f32.mrb[1].mxu1 }
  0xf6   :  { %v194_v30 = vadd.f32 %v2898_v28, %v2680_v19  ;;  %v188_v31 = vpop.f32.mrb[5].mxu0  ;;  %v292_v3 = vadd.f32 %v2689_v63, %v291_v2 }
  0xf7   :  { %v189_v33 = vadd.f32 %v2680_v19, %v188_v31  ;;  %331 = vst.msk [vmem:[#allocation3 + $0x8] sm:$0xff] %vm207_vm2, %v297_v1  ;;  %v474_v25 = vld [vmem:[#allocation2 + $0x8] sm:$0xff] }
  0xf8   :  { %213 = vst.msk [vmem:[#allocation2 + $0x28] sm:$0xff] %vm207_vm2, %v194_v30  ;;  %v360_v42 = vld [vmem:[#allocation2] sm:$0xff]  ;;  %330 = vst.msk [vmem:[#allocation3] sm:$0xff] %vm207_vm2, %v292_v3  ;;  %v2911_v4 = vpop.f32.mrb[2].mxu1 }
  0xf9   :  { %212 = vst.msk [vmem:[#allocation2 + $0x20] sm:$0xff] %vm207_vm2, %v189_v33  ;;  %v2901_v34 = vpop.f32.mrb[6].mxu0  ;;  %v307_v5 = vadd.f32 %v2911_v4, %v2689_v63  ;;  %v301_v6 = vpop.f32.mrb[3].mxu1 }
  0xfa   :  { %v204_v35 = vadd.f32 %v2901_v34, %v2680_v19  ;;  %v198_v36 = vpop.f32.mrb[7].mxu0  ;;  %v302_v9 = vadd.f32 %v2689_v63, %v301_v6 }
  0xfb   :  { %v199_v37 = vadd.f32 %v2680_v19, %v198_v36  ;;  %333 = vst.msk [vmem:[#allocation3 + $0x18] sm:$0xff] %vm207_vm2, %v307_v5 }
  0xfc   :  { %215 = vst.msk [vmem:[#allocation2 + $0x38] sm:$0xff] %vm207_vm2, %v204_v35  ;;  %332 = vst.msk [vmem:[#allocation3 + $0x10] sm:$0xff] %vm207_vm2, %v302_v9  ;;  %v2914_v10 = vpop.f32.mrb[4].mxu1  ;;  %v3750_v9 = vld [vmem:[%s4163_s1 + $0x18] sm:$0xff] }
  0xfd   :  { %214 = vst.msk [vmem:[#allocation2 + $0x30] sm:$0xff] %vm207_vm2, %v199_v37  ;;  %v432_v39 = vpop.f32.mrb[8].mxu0  ;;  %v317_v11 = vadd.f32 %v2914_v10, %v2689_v63  ;;  %v311_v12 = vpop.f32.mrb[5].mxu1  ;;  %v702_v10 = vld [vmem:[#allocation2 + $0x18] sm:$0xff] }
  0xfe   :  { %v433_v40 = vadd.f32 %v3652_v38, %v432_v39  ;;  %v2928_v41 = vpop.f32.mrb[9].mxu0  ;;  %v312_v14 = vadd.f32 %v2689_v63, %v311_v12 }
  0xff   :  { %335 = vst.msk [vmem:[#allocation3 + $0x28] sm:$0xff] %vm207_vm2, %v317_v11 }
 0x100   :  { %444 = vrot.lane.b32.xlu0 %v433_v40, %s3458_s20  ;;  %v436_v43 = vadd.f32 %v433_v40, %v360_v42  ;;  %334 = vst.msk [vmem:[#allocation3 + $0x20] sm:$0xff] %vm207_vm2, %v312_v14  ;;  %v2917_v15 = vpop.f32.mrb[6].mxu1 }
 0x101   :  { %v327_v16 = vadd.f32 %v2917_v15, %v2689_v63  ;;  %v321_v17 = vpop.f32.mrb[7].mxu1 }
 0x102   :  { %v2700_v44 = vmul.f32 -1.442695, %v436_v43  ;;  %v322_v19 = vadd.f32 %v2689_v63, %v321_v17 }
 0x103   :  { %337 = vst.msk [vmem:[#allocation3 + $0x38] sm:$0xff] %vm207_vm2, %v327_v16 }
 0x104   :  { %3274 = vpow2.f32 %v2700_v44  ;;  %336 = vst.msk [vmem:[#allocation3 + $0x30] sm:$0xff] %vm207_vm2, %v322_v19 }
 0x10e   :  { %v3275_v45 = vpop.eup %3274 }
 0x10f   :  { %v440_v46 = vadd.f32 1.0, %v3275_v45 }
 0x111   :  { %3276 = vrcp.f32 %v440_v46 }
 0x11b   :  { %v3277_v47 = vpop.eup %3276 }
 0x11c   :  { %v454_v57 = vsub.f32 1.0, %v3277_v47  ;;  %v460_v59 = vmul.f32 0.0, %v3277_v47 }
 0x172   :  { %v445_v48 = vpop.permute.xlu0 %444 }
 0x173   :  { %v447_v49 = vmul.f32 %v3277_v47, %v445_v48  ;;  %v588_v48 = vld [vmem:[#allocation2 + $0x10] sm:$0xff] }
 0x175   :  { %449 = vrot.lane.b32.xlu0 %v447_v49, %s3458_s20 }
 0x1e7   :  { %v450_v50 = vpop.permute.xlu0 %449 }
 0x1e8   :  { %v452_v51 = vadd.f32 %v450_v50, %v360_v42 }
 0x1ea   :  { %3278 = vtanh.f32 %v452_v51 }
 0x1f4   :  { %v3279_v55 = vpop.eup %3278 }
 0x1f5   :  { %456 = vrot.lane.b32.xlu1 %v3279_v55, %s3459_s25 }
 0x267   :  { %v457_v58 = vpop.permute.xlu1 %456 }
 0x268   :  { %v459_v60 = vmul.f32 %v457_v58, %v454_v57 }
 0x26a   :  { %v461_v61 = vadd.f32 %v460_v59, %v459_v60 }
 0x26c   :  { %v467_v62 = vmul.f32 %v465_v56, %v461_v61 }
 0x26e   :  { %469 = vrot.lane.b32.xlu0 %v467_v62, %s3459_s25 }
 0x2e0   :  { %v470_v20 = vpop.permute.xlu0 %469 }
 0x2e1   :  { %472 = vst.msk [vmem:[#allocation4] sm:$0xff] %vm362_vm3, %v470_v20  ;;  %2938 = vmatmul.mubr.msk.f32.vlgmr.msra.gmra.mrb[8].mxu1 %vm362_vm3, %v470_v20 }
 0x2e2   :  { %3162 = vmatpush3.bf16.msra.mxu1 %v3572_v7  ;;  %2959 = vmatprep.mubr.msk.f32.mxu1 %vm3455_vm1, %v3456_v18 }
 0x2e3   :  { %3163 = vmatprep.subr.bf16.mxu1 %v3454_v8 }
 0x2e6   :  { %3165 = vmatpush3.bf16.msra.mxu1 %v3596_v13 }
 0x2e7   :  { %3172 = vmatprep.subr.bf16.mxu1 %v3454_v8 }
 0x3b4   :  { %v545_v21 = vpop.f32.mrb[8].mxu1 }
 0x3b5   :  { %v546_v22 = vadd.f32 %v3652_v38, %v545_v21  ;;  %v2939_v23 = vpop.f32.mrb[9].mxu1 }
 0x3b7   :  { %557 = vrot.lane.b32.xlu1 %v546_v22, %s3458_s20  ;;  %v549_v26 = vadd.f32 %v546_v22, %v474_v25 }
 0x3b9   :  { %v2703_v27 = vmul.f32 -1.442695, %v549_v26 }
 0x3bb   :  { %577 = vperm.xlu1 %3272, %v3712_v24   ;;  %3280 = vpow2.f32 %v2703_v27 }
 0x3c5   :  { %v3281_v28 = vpop.eup %3280 }
 0x3c6   :  { %v553_v29 = vadd.f32 1.0, %v3281_v28 }
 0x3c8   :  { %3282 = vrcp.f32 %v553_v29 }
 0x3d2   :  { %v3283_v30 = vpop.eup %3282 }
 0x3d3   :  { %v567_v36 = vsub.f32 1.0, %v3283_v30  ;;  %v573_v39 = vmul.f32 %v3283_v30, %v467_v62 }
 0x429   :  { %v558_v31 = vpop.permute.xlu1 %557 }
 0x42a   :  { %v560_v32 = vmul.f32 %v3283_v30, %v558_v31 }
 0x42c   :  { %562 = vrot.lane.b32.xlu0 %v560_v32, %s3458_s20 }
 0x43a   :  { %v578_v42 = vpop.permute.xlu1 %577 }
 0x49e   :  { %v563_v33 = vpop.permute.xlu0 %562 }
 0x49f   :  { %v565_v34 = vadd.f32 %v563_v33, %v474_v25 }
 0x4a1   :  { %3284 = vtanh.f32 %v565_v34 }
 0x4ab   :  { %v3285_v35 = vpop.eup %3284 }
 0x4ac   :  { %569 = vrot.lane.b32.xlu0 %v3285_v35, %s3459_s25  ;;  %v3769_v35 = vld [vmem:[%s4163_s1 + $0x20] sm:$0xff] }
 0x51e   :  { %v570_v37 = vpop.permute.xlu0 %569 }
 0x51f   :  { %v572_v40 = vmul.f32 %v570_v37, %v567_v36  ;;  %v816_v36 = vld [vmem:[#allocation2 + $0x20] sm:$0xff] }
 0x521   :  { %v574_v41 = vadd.f32 %v573_v39, %v572_v40 }
 0x523   :  { %v580_v43 = vmul.f32 %v578_v42, %v574_v41 }
 0x525   :  { %582 = vrot.lane.b32.xlu1 %v580_v43, %s3459_s25 }
 0x597   :  { %v583_v44 = vpop.permute.xlu1 %582 }
 0x598   :  { %586 = vst.msk [vmem:[#allocation4 + $0x8] sm:$0xff] %vm362_vm3, %v583_v44  ;;  %2949 = vmatmul.mubr.msk.f32.vlgmr.msra.gmra.mrb[10].mxu0 %vm362_vm3, %v583_v44 }
 0x599   :  { %3168 = vmatpush3.bf16.msra.mxu0 %v3572_v7  ;;  %2970 = vmatprep.mubr.msk.f32.mxu0 %vm3455_vm1, %v3456_v18 }
 0x59a   :  { %3169 = vmatprep.subr.bf16.mxu0 %v3454_v8 }
 0x59d   :  { %3171 = vmatpush3.bf16.msra.mxu0 %v3596_v13 }
 0x59e   :  { %3178 = vmatprep.subr.bf16.mxu0 %v3454_v8 }
 0x66b   :  { %v659_v45 = vpop.f32.mrb[10].mxu0 }
 0x66c   :  { %v660_v46 = vadd.f32 %v3652_v38, %v659_v45  ;;  %v2950_v47 = vpop.f32.mrb[11].mxu0 }
 0x66e   :  { %671 = vrot.lane.b32.xlu0 %v660_v46, %s3458_s20  ;;  %v663_v49 = vadd.f32 %v660_v46, %v588_v48 }
 0x670   :  { %v2706_v50 = vmul.f32 -1.442695, %v663_v49 }
 0x672   :  { %3286 = vpow2.f32 %v2706_v50  ;;  %691 = vperm.xlu0 %3273, %v3731_v53  }
 0x67c   :  { %v3287_v51 = vpop.eup %3286 }
 0x67d   :  { %v667_v52 = vadd.f32 1.0, %v3287_v51 }
 0x67f   :  { %3288 = vrcp.f32 %v667_v52 }
 0x689   :  { %v3289_v54 = vpop.eup %3288 }
 0x68a   :  { %v681_v60 = vsub.f32 1.0, %v3289_v54  ;;  %v687_v63 = vmul.f32 %v3289_v54, %v580_v43 }
 0x6e0   :  { %v672_v55 = vpop.permute.xlu0 %671 }
 0x6e1   :  { %v674_v56 = vmul.f32 %v3289_v54, %v672_v55 }
 0x6e3   :  { %676 = vrot.lane.b32.xlu1 %v674_v56, %s3458_s20 }
 0x6f1   :  { %v692_v0 = vpop.permute.xlu0 %691 }
 0x755   :  { %v677_v57 = vpop.permute.xlu1 %676 }
 0x756   :  { %v679_v58 = vadd.f32 %v677_v57, %v588_v48 }
 0x758   :  { %3290 = vtanh.f32 %v679_v58 }
 0x762   :  { %v3291_v59 = vpop.eup %3290 }
 0x763   :  { %683 = vrot.lane.b32.xlu1 %v3291_v59, %s3459_s25 }
 0x7d5   :  { %v684_v61 = vpop.permute.xlu1 %683 }
 0x7d6   :  { %v686_v62 = vmul.f32 %v684_v61, %v681_v60  ;;  %v3788_v60 = vld [vmem:[%s4163_s1 + $0x28] sm:$0xff] }
 0x7d8   :  { %v688_v1 = vadd.f32 %v687_v63, %v686_v62 }
 0x7da   :  { %v694_v2 = vmul.f32 %v692_v0, %v688_v1 }
 0x7dc   :  { %696 = vrot.lane.b32.xlu1 %v694_v2, %s3459_s25 }
 0x84e   :  { %v697_v3 = vpop.permute.xlu1 %696 }
 0x84f   :  { %700 = vst.msk [vmem:[#allocation4 + $0x10] sm:$0xff] %vm362_vm3, %v697_v3  ;;  %2960 = vmatmul.mubr.msk.f32.vlgmr.msra.gmra.mrb[10].mxu1 %vm362_vm3, %v697_v3 }
 0x850   :  { %3174 = vmatpush3.bf16.msra.mxu1 %v3572_v7  ;;  %2981 = vmatprep.mubr.msk.f32.mxu1 %vm3455_vm1, %v3456_v18 }
 0x851   :  { %3175 = vmatprep.subr.bf16.mxu1 %v3454_v8 }
 0x854   :  { %3177 = vmatpush3.bf16.msra.mxu1 %v3596_v13 }
 0x855   :  { %3184 = vmatprep.subr.bf16.mxu1 %v3454_v8 }
 0x922   :  { %v773_v4 = vpop.f32.mrb[10].mxu1 }
 0x923   :  { %v774_v5 = vadd.f32 %v3652_v38, %v773_v4  ;;  %v2961_v6 = vpop.f32.mrb[11].mxu1 }
 0x925   :  { %785 = vrot.lane.b32.xlu0 %v774_v5, %s3458_s20  ;;  %v777_v11 = vadd.f32 %v774_v5, %v702_v10 }
 0x927   :  { %v2709_v12 = vmul.f32 -1.442695, %v777_v11 }
 0x929   :  { %805 = vperm.xlu0 %3273, %v3750_v9   ;;  %3292 = vpow2.f32 %v2709_v12 }
 0x933   :  { %v3293_v14 = vpop.eup %3292 }
 0x934   :  { %v781_v15 = vadd.f32 1.0, %v3293_v14 }
 0x936   :  { %3294 = vrcp.f32 %v781_v15 }
 0x940   :  { %v3295_v16 = vpop.eup %3294 }
 0x941   :  { %v795_v23 = vsub.f32 1.0, %v3295_v16  ;;  %v801_v26 = vmul.f32 %v3295_v16, %v694_v2 }
 0x997   :  { %v786_v17 = vpop.permute.xlu0 %785 }
 0x998   :  { %v788_v19 = vmul.f32 %v3295_v16, %v786_v17  ;;  %v342_v17 = vld [vmem:[%s4169_s7] sm:$0xff] }
 0x99a   :  { %790 = vrot.lane.b32.xlu1 %v788_v19, %s3458_s20  ;;  %v343_v19 = vld [vmem:[%s4169_s7 + $0x8] sm:$0xff] }
 0x9a8   :  { %v806_v29 = vpop.permute.xlu0 %805 }
 0xa0c   :  { %v791_v20 = vpop.permute.xlu1 %790 }
 0xa0d   :  { %v793_v21 = vadd.f32 %v791_v20, %v702_v10  ;;  %v3803_v20 = vpack.c.bf16 %v343_v19, %v342_v17 }
 0xa0f   :  { %3296 = vtanh.f32 %v793_v21  ;;  %v344_v21 = vld [vmem:[%s4169_s7 + $0x10] sm:$0xff] }
 0xa19   :  { %v3297_v22 = vpop.eup %3296 }
 0xa1a   :  { %797 = vrot.lane.b32.xlu1 %v3297_v22, %s3459_s25  ;;  %v345_v22 = vld [vmem:[%s4169_s7 + $0x18] sm:$0xff] }
 0xa8c   :  { %v798_v25 = vpop.permute.xlu1 %797 }
 0xa8d   :  { %v800_v27 = vmul.f32 %v798_v25, %v795_v23  ;;  %v3814_v25 = vpack.c.bf16 %v345_v22, %v344_v21  ;;  %v1383_v21 = vld [vmem:[#allocation3 + $0x30] sm:$0xff] }
 0xa8f   :  { %v802_v28 = vadd.f32 %v801_v26, %v800_v27 }
 0xa91   :  { %v808_v30 = vmul.f32 %v806_v29, %v802_v28  ;;  %v3833_v29 = vld [vmem:[%s4171_s9] ss:$0 sm:$0xff] }
 0xa93   :  { %810 = vrot.lane.b32.xlu0 %v808_v30, %s3459_s25 }
 0xb05   :  { %v811_v31 = vpop.permute.xlu0 %810 }
 0xb06   :  { %814 = vst.msk [vmem:[#allocation4 + $0x18] sm:$0xff] %vm362_vm3, %v811_v31  ;;  %2971 = vmatmul.mubr.msk.f32.vlgmr.msra.gmra.mrb[12].mxu0 %vm362_vm3, %v811_v31 }
 0xb07   :  { %3180 = vmatpush3.bf16.msra.mxu0 %v3572_v7  ;;  %2992 = vmatprep.mubr.msk.f32.mxu0 %vm3455_vm1, %v3456_v18 }
 0xb08   :  { %3181 = vmatprep.subr.bf16.mxu0 %v3454_v8 }
 0xb0b   :  { %3183 = vmatpush3.bf16.msra.mxu0 %v3596_v13 }
 0xb0c   :  { %3190 = vmatprep.subr.bf16.mxu0 %v3454_v8 }
 0xbd9   :  { %v887_v32 = vpop.f32.mrb[12].mxu0 }
 0xbda   :  { %v888_v33 = vadd.f32 %v3652_v38, %v887_v32  ;;  %v2972_v34 = vpop.f32.mrb[13].mxu0 }
 0xbdc   :  { %899 = vrot.lane.b32.xlu1 %v888_v33, %s3458_s20  ;;  %v891_v37 = vadd.f32 %v888_v33, %v816_v36  ;;  %v1044_v33 = vld [vmem:[#allocation2 + $0x30] sm:$0xff] }
 0xbde   :  { %v2712_v39 = vmul.f32 -1.442695, %v891_v37  ;;  %v1272_v37 = vld [vmem:[#allocation3 + $0x38] sm:$0xff] }
 0xbe0   :  { %919 = vperm.xlu1 %3272, %v3769_v35   ;;  %3298 = vpow2.f32 %v2712_v39 }
 0xbea   :  { %v3299_v40 = vpop.eup %3298 }
 0xbeb   :  { %v895_v41 = vadd.f32 1.0, %v3299_v40 }
 0xbed   :  { %3300 = vrcp.f32 %v895_v41 }
 0xbf7   :  { %v3301_v42 = vpop.eup %3300 }
 0xbf8   :  { %v909_v48 = vsub.f32 1.0, %v3301_v42  ;;  %v915_v50 = vmul.f32 %v3301_v42, %v808_v30 }
 0xc4e   :  { %v900_v43 = vpop.permute.xlu1 %899 }
 0xc4f   :  { %v902_v44 = vmul.f32 %v3301_v42, %v900_v43 }
 0xc51   :  { %904 = vrot.lane.b32.xlu0 %v902_v44, %s3458_s20 }
 0xc5f   :  { %v920_v54 = vpop.permute.xlu1 %919 }
 0xcc3   :  { %v905_v45 = vpop.permute.xlu0 %904 }
 0xcc4   :  { %v907_v46 = vadd.f32 %v905_v45, %v816_v36 }
 0xcc6   :  { %3302 = vtanh.f32 %v907_v46 }
 0xcd0   :  { %v3303_v47 = vpop.eup %3302 }
 0xcd1   :  { %911 = vrot.lane.b32.xlu0 %v3303_v47, %s3459_s25  ;;  %v3841_v47 = vld [vmem:[%s4163_s1 + $0x30] sm:$0xff] }
 0xd43   :  { %v912_v49 = vpop.permute.xlu0 %911 }
 0xd44   :  { %v914_v51 = vmul.f32 %v912_v49, %v909_v48 }
 0xd46   :  { %v916_v52 = vadd.f32 %v915_v50, %v914_v51  ;;  %v3847_v50 = vld [vmem:[%s4163_s1 + $0x38] sm:$0xff] }
 0xd48   :  { %v922_v55 = vmul.f32 %v920_v54, %v916_v52 }
 0xd4a   :  { %924 = vrot.lane.b32.xlu1 %v922_v55, %s3459_s25 }
 0xdbc   :  { %v925_v56 = vpop.permute.xlu1 %924 }
 0xdbd   :  { %928 = vst.msk [vmem:[#allocation4 + $0x20] sm:$0xff] %vm362_vm3, %v925_v56  ;;  %2982 = vmatmul.mubr.msk.f32.vlgmr.msra.gmra.mrb[12].mxu1 %vm362_vm3, %v925_v56 }
 0xdbe   :  { %3186 = vmatpush3.bf16.msra.mxu1 %v3572_v7  ;;  %3003 = vmatprep.mubr.msk.f32.mxu1 %vm3455_vm1, %v3456_v18  ;;  %v930_v7 = vld [vmem:[#allocation2 + $0x28] sm:$0xff] }
 0xdbf   :  { %3187 = vmatprep.subr.bf16.mxu1 %v3454_v8 }
 0xdc2   :  { %3189 = vmatpush3.bf16.msra.mxu1 %v3596_v13 }
 0xdc3   :  { %3196 = vmatprep.subr.bf16.mxu1 %v3454_v8 }
 0xe90   :  { %v1001_v57 = vpop.f32.mrb[12].mxu1 }
 0xe91   :  { %v1002_v58 = vadd.f32 %v3652_v38, %v1001_v57  ;;  %v2983_v59 = vpop.f32.mrb[13].mxu1 }
 0xe93   :  { %1013 = vrot.lane.b32.xlu0 %v1002_v58, %s3458_s20  ;;  %v1005_v61 = vadd.f32 %v1002_v58, %v930_v7 }
 0xe95   :  { %v2715_v62 = vmul.f32 -1.442695, %v1005_v61 }
 0xe97   :  { %1033 = vperm.xlu0 %3273, %v3788_v60   ;;  %3304 = vpow2.f32 %v2715_v62 }
 0xea1   :  { %v3305_v13 = vpop.eup %3304 }
 0xea2   :  { %v1009_v63 = vadd.f32 1.0, %v3305_v13 }
 0xea4   :  { %3306 = vrcp.f32 %v1009_v63 }
 0xeae   :  { %v3307_v0 = vpop.eup %3306 }
 0xeaf   :  { %v1023_v6 = vsub.f32 1.0, %v3307_v0  ;;  %v1029_v11 = vmul.f32 %v3307_v0, %v922_v55 }
 0xf05   :  { %v1014_v1 = vpop.permute.xlu0 %1013 }
 0xf06   :  { %v1016_v2 = vmul.f32 %v3307_v0, %v1014_v1 }
 0xf08   :  { %1018 = vrot.lane.b32.xlu1 %v1016_v2, %s3458_s20 }
 0xf16   :  { %v1034_v15 = vpop.permute.xlu0 %1033 }
 0xf7a   :  { %v1019_v3 = vpop.permute.xlu1 %1018 }
 0xf7b   :  { %v1021_v4 = vadd.f32 %v1019_v3, %v930_v7 }
 0xf7d   :  { %3308 = vtanh.f32 %v1021_v4 }
 0xf87   :  { %v3309_v5 = vpop.eup %3308 }
 0xf88   :  { %1025 = vrot.lane.b32.xlu1 %v3309_v5, %s3459_s25 }
 0xffa   :  { %v1026_v10 = vpop.permute.xlu1 %1025 }
 0xffb   :  { %v1028_v12 = vmul.f32 %v1026_v10, %v1023_v6 }
 0xffd   :  { %v1030_v14 = vadd.f32 %v1029_v11, %v1028_v12 }
 0xfff   :  { %v3793_v16 = vmul.f32 %v1034_v15, %v1030_v14 }
0x1001   :  { %1038 = vrot.lane.b32.xlu0 %v3793_v16, %s3459_s25 }
0x1073   :  { %v1039_v23 = vpop.permute.xlu0 %1038 }
0x1074   :  { %1042 = vst.msk [vmem:[#allocation4 + $0x28] sm:$0xff] %vm362_vm3, %v1039_v23  ;;  %2993 = vmatmul.mubr.msk.f32.vlgmr.msra.gmra.mrb[14].mxu0 %vm362_vm3, %v1039_v23 }
0x1075   :  { %3192 = vmatpush3.bf16.msra.mxu0 %v3803_v20  ;;  %3014 = vmatprep.mubr.msk.f32.mxu0 %vm3455_vm1, %v3456_v18 }
0x1076   :  { %3193 = vmatprep.subr.bf16.mxu0 %v3454_v8 }
0x1079   :  { %3195 = vmatpush3.bf16.msra.mxu0 %v3814_v25 }
0x107a   :  { %3202 = vmatprep.subr.bf16.mxu0 %v3454_v8 }
0x107c   :  { %3015 = vmatmul.mubr.f32.vlgmr.msra.gmra.mrb[16].mxu0 %v3456_v18 }
0x107d   :  { %3204 = vmatpush3.bf16.msra.mxu0 %v3803_v20  ;;  %3036 = vmatprep.mubr.msk.f32.mxu0 %vm3455_vm1, %v3456_v18 }
0x107e   :  { %3205 = vmatprep.subr.bf16.mxu0 %v3454_v8 }
0x1081   :  { %3207 = vmatpush3.bf16.msra.mxu0 %v3814_v25 }
0x1082   :  { %3214 = vmatprep.subr.bf16.mxu0 %v3454_v8 }
0x1147   :  { %v1115_v26 = vpop.f32.mrb[14].mxu0 }
0x1148   :  { %v1116_v27 = vadd.f32 %v3652_v38, %v1115_v26  ;;  %v2994_v28 = vpop.f32.mrb[15].mxu0 }
0x114a   :  { %1127 = vrot.lane.b32.xlu1 %v1116_v27, %s3458_s20  ;;  %v1119_v34 = vadd.f32 %v1116_v27, %v1044_v33 }
0x114c   :  { %v2718_v36 = vmul.f32 -1.442695, %v1119_v34 }
0x114e   :  { %3310 = vpow2.f32 %v2718_v36 }
0x114f   :  { %v1340_v30 = vpop.f32.mrb[16].mxu0 }
0x1150   :  { %v1341_v31 = vadd.f32 %v3833_v29, %v1340_v30  ;;  %v3016_v32 = vpop.f32.mrb[17].mxu0 }
0x1152   :  { %1352 = vrot.lane.b32.xlu0 %v1341_v31, %s3458_s20  ;;  %v1344_v38 = vadd.f32 %v1341_v31, %v1272_v37 }
0x1154   :  { %v2723_v39 = vmul.f32 -1.442695, %v1344_v38 }
0x1156   :  { %3312 = vpow2.f32 %v2723_v39 }
0x1158   :  { %v3311_v40 = vpop.eup %3310 }
0x1159   :  { %v1123_v41 = vadd.f32 1.0, %v3311_v40 }
0x115b   :  { %3314 = vrcp.f32 %v1123_v41 }
0x1160   :  { %v3313_v42 = vpop.eup %3312 }
0x1161   :  { %v1348_v43 = vadd.f32 1.0, %v3313_v42 }
0x1163   :  { %3316 = vrcp.f32 %v1348_v43 }
0x1165   :  { %v3315_v44 = vpop.eup %3314 }
0x1166   :  { %v1137_v59 = vsub.f32 1.0, %v3315_v44  ;;  %v1143_v61 = vmul.f32 %v3315_v44, %v3793_v16 }
0x116d   :  { %v3317_v48 = vpop.eup %3316 }
0x116e   :  { %v1362_v1 = vsub.f32 1.0, %v3317_v48  ;;  %v1368_v3 = vmul.f32 0.0, %v3317_v48 }
0x11bc   :  { %v1128_v45 = vpop.permute.xlu1 %1127 }
0x11bd   :  { %v1130_v46 = vmul.f32 %v3315_v44, %v1128_v45 }
0x11bf   :  { %1132 = vrot.lane.b32.xlu1 %v1130_v46, %s3458_s20 }
0x11c3   :  { %1147 = vperm.xlu1 %3272, %v3841_v47  }
0x11c4   :  { %v1353_v49 = vpop.permute.xlu0 %1352 }
0x11c5   :  { %v1355_v51 = vmul.f32 %v3317_v48, %v1353_v49  ;;  %v1496_v48 = vld [vmem:[#allocation3 + $0x28] sm:$0xff] }
0x11c7   :  { %1357 = vrot.lane.b32.xlu0 %v1355_v51, %s3458_s20  ;;  %1372 = vperm.xlu1 %3272, %v3847_v50  }
0x1231   :  { %v1133_v52 = vpop.permute.xlu1 %1132 }
0x1232   :  { %v1135_v54 = vadd.f32 %v1133_v52, %v1044_v33 }
0x1234   :  { %3318 = vtanh.f32 %v1135_v54 }
0x1239   :  { %v1358_v55 = vpop.permute.xlu0 %1357 }
0x123a   :  { %v1360_v56 = vadd.f32 %v1358_v55, %v1272_v37 }
0x123c   :  { %3320 = vtanh.f32 %v1360_v56 }
0x123e   :  { %v3319_v57 = vpop.eup %3318 }
0x123f   :  { %1139 = vrot.lane.b32.xlu0 %v3319_v57, %s3459_s25 }
0x1242   :  { %v1148_v63 = vpop.permute.xlu1 %1147 }
0x1246   :  { %v3321_v58 = vpop.eup %3320  ;;  %v1373_v6 = vpop.permute.xlu1 %1372 }
0x1247   :  { %1364 = vrot.lane.b32.xlu0 %v3321_v58, %s3459_s25 }
0x12b1   :  { %v1140_v7 = vpop.permute.xlu0 %1139 }
0x12b2   :  { %v1142_v62 = vmul.f32 %v1140_v7, %v1137_v59 }
0x12b4   :  { %v1144_v13 = vadd.f32 %v1143_v61, %v1142_v62 }
0x12b6   :  { %v3854_v0 = vmul.f32 %v1148_v63, %v1144_v13 }
0x12b8   :  { %1152 = vrot.lane.b32.xlu1 %v3854_v0, %s3459_s25 }
0x12b9   :  { %v1365_v2 = vpop.permute.xlu0 %1364 }
0x12ba   :  { %v1367_v4 = vmul.f32 %v1365_v2, %v1362_v1 }
0x12bc   :  { %v1369_v5 = vadd.f32 %v1368_v3, %v1367_v4 }
0x12be   :  { %v1375_v10 = vmul.f32 %v1373_v6, %v1369_v5 }
0x12c0   :  { %1377 = vrot.lane.b32.xlu0 %v1375_v10, %s3459_s25 }
0x132a   :  { %v1153_v11 = vpop.permute.xlu1 %1152 }
0x132b   :  { %1156 = vst.msk [vmem:[#allocation4 + $0x30] sm:$0xff] %vm362_vm3, %v1153_v11  ;;  %3004 = vmatmul.mubr.msk.f32.vlgmr.msra.gmra.mrb[14].mxu1 %vm362_vm3, %v1153_v11 }
0x132c   :  { %3198 = vmatpush3.bf16.msra.mxu1 %v3803_v20  ;;  %3025 = vmatprep.mubr.msk.f32.mxu1 %vm3455_vm1, %v3456_v18 }
0x132d   :  { %3199 = vmatprep.subr.bf16.mxu1 %v3454_v8 }
0x1330   :  { %3201 = vmatpush3.bf16.msra.mxu1 %v3814_v25 }
0x1331   :  { %3208 = vmatprep.subr.bf16.mxu1 %v3454_v8 }
0x1332   :  { %v1378_v12 = vpop.permute.xlu0 %1377 }
0x1333   :  { %1381 = vst.msk [vmem:[#allocation5 + $0x38] sm:$0xff] %vm362_vm3, %v1378_v12  ;;  %3026 = vmatmul.mubr.msk.f32.vlgmr.msra.gmra.mrb[16].mxu1 %vm362_vm3, %v1378_v12 }
0x1334   :  { %3210 = vmatpush3.bf16.msra.mxu1 %v3803_v20  ;;  %3047 = vmatprep.mubr.msk.f32.mxu1 %vm3455_vm1, %v3456_v18 }
0x1335   :  { %3211 = vmatprep.subr.bf16.mxu1 %v3454_v8 }
0x1338   :  { %3213 = vmatpush3.bf16.msra.mxu1 %v3814_v25 }
0x1339   :  { %3220 = vmatprep.subr.bf16.mxu1 %v3454_v8 }
0x13fe   :  { %v3875_v14 = vpop.f32.mrb[14].mxu1 }
0x13ff   :  { %v3005_v15 = vpop.f32.mrb[15].mxu1 }
0x1406   :  { %v1453_v16 = vpop.f32.mrb[16].mxu1 }
0x1407   :  { %v1454_v17 = vadd.f32 %v3833_v29, %v1453_v16  ;;  %v3027_v19 = vpop.f32.mrb[17].mxu1 }
0x1409   :  { %1465 = vrot.lane.b32.xlu1 %v1454_v17, %s3458_s20  ;;  %v1457_v22 = vadd.f32 %v1454_v17, %v1383_v21 }
0x140b   :  { %v2726_v23 = vmul.f32 -1.442695, %v1457_v22 }
0x140d   :  { %1485 = vperm.xlu1 %3272, %v3841_v47   ;;  %3322 = vpow2.f32 %v2726_v23 }
0x1417   :  { %v3323_v26 = vpop.eup %3322 }
0x1418   :  { %v1461_v27 = vadd.f32 1.0, %v3323_v26 }
0x141a   :  { %3324 = vrcp.f32 %v1461_v27 }
0x1424   :  { %v3325_v28 = vpop.eup %3324 }
0x1425   :  { %v1475_v36 = vsub.f32 1.0, %v3325_v28  ;;  %v1481_v38 = vmul.f32 %v3325_v28, %v1375_v10  ;;  %v1609_v10 = vld [vmem:[#allocation3 + $0x20] sm:$0xff] }
0x147b   :  { %v1466_v30 = vpop.permute.xlu1 %1465 }
0x147c   :  { %v1468_v31 = vmul.f32 %v3325_v28, %v1466_v30 }
0x147e   :  { %1470 = vrot.lane.b32.xlu0 %v1468_v31, %s3458_s20 }
0x148c   :  { %v1486_v41 = vpop.permute.xlu1 %1485 }
0x14f0   :  { %v1471_v32 = vpop.permute.xlu0 %1470 }
0x14f1   :  { %v1473_v33 = vadd.f32 %v1471_v32, %v1383_v21 }
0x14f3   :  { %3326 = vtanh.f32 %v1473_v33 }
0x14fd   :  { %v3327_v34 = vpop.eup %3326 }
0x14fe   :  { %1477 = vrot.lane.b32.xlu0 %v3327_v34, %s3459_s25 }
0x1570   :  { %v1478_v37 = vpop.permute.xlu0 %1477 }
0x1571   :  { %v1480_v39 = vmul.f32 %v1478_v37, %v1475_v36 }
0x1573   :  { %v1482_v40 = vadd.f32 %v1481_v38, %v1480_v39  ;;  %v1722_v39 = vld [vmem:[#allocation3 + $0x18] sm:$0xff] }
0x1575   :  { %v1488_v42 = vmul.f32 %v1486_v41, %v1482_v40 }
0x1577   :  { %1490 = vrot.lane.b32.xlu1 %v1488_v42, %s3459_s25 }
0x15e9   :  { %v1491_v43 = vpop.permute.xlu1 %1490 }
0x15ea   :  { %1494 = vst.msk [vmem:[#allocation5 + $0x30] sm:$0xff] %vm362_vm3, %v1491_v43  ;;  %3037 = vmatmul.mubr.msk.f32.vlgmr.msra.gmra.mrb[18].mxu0 %vm362_vm3, %v1491_v43 }
0x15eb   :  { %3216 = vmatpush3.bf16.msra.mxu0 %v3803_v20  ;;  %3058 = vmatprep.mubr.msk.f32.mxu0 %vm3455_vm1, %v3456_v18 }
0x15ec   :  { %3217 = vmatprep.subr.bf16.mxu0 %v3454_v8 }
0x15ef   :  { %3219 = vmatpush3.bf16.msra.mxu0 %v3814_v25 }
0x15f0   :  { %3226 = vmatprep.subr.bf16.mxu0 %v3454_v8 }
0x16bd   :  { %v1566_v44 = vpop.f32.mrb[18].mxu0 }
0x16be   :  { %v1567_v45 = vadd.f32 %v3833_v29, %v1566_v44  ;;  %v3038_v46 = vpop.f32.mrb[19].mxu0 }
0x16c0   :  { %1578 = vrot.lane.b32.xlu0 %v1567_v45, %s3458_s20  ;;  %v1570_v49 = vadd.f32 %v1567_v45, %v1496_v48 }
0x16c2   :  { %v2729_v51 = vmul.f32 -1.442695, %v1570_v49 }
0x16c4   :  { %1598 = vperm.xlu0 %3273, %v3788_v60   ;;  %3328 = vpow2.f32 %v2729_v51 }
0x16ce   :  { %v3329_v52 = vpop.eup %3328 }
0x16cf   :  { %v1574_v54 = vadd.f32 1.0, %v3329_v52 }
0x16d1   :  { %3330 = vrcp.f32 %v1574_v54 }
0x16db   :  { %v3331_v55 = vpop.eup %3330 }
0x16dc   :  { %v1588_v61 = vsub.f32 1.0, %v3331_v55  ;;  %v1594_v62 = vmul.f32 %v3331_v55, %v1488_v42 }
0x1732   :  { %v1579_v56 = vpop.permute.xlu0 %1578 }
0x1733   :  { %v1581_v57 = vmul.f32 %v3331_v55, %v1579_v56 }
0x1735   :  { %1583 = vrot.lane.b32.xlu1 %v1581_v57, %s3458_s20 }
0x1743   :  { %v1599_v1 = vpop.permute.xlu0 %1598 }
0x17a7   :  { %v1584_v58 = vpop.permute.xlu1 %1583 }
0x17a8   :  { %v1586_v59 = vadd.f32 %v1584_v58, %v1496_v48 }
0x17aa   :  { %3332 = vtanh.f32 %v1586_v59 }
0x17b4   :  { %v3333_v7 = vpop.eup %3332 }
0x17b5   :  { %1590 = vrot.lane.b32.xlu1 %v3333_v7, %s3459_s25 }
0x1827   :  { %v1591_v60 = vpop.permute.xlu1 %1590 }
0x1828   :  { %v1593_v13 = vmul.f32 %v1591_v60, %v1588_v61 }
0x182a   :  { %v1595_v63 = vadd.f32 %v1594_v62, %v1593_v13  ;;  %v1835_v62 = vld [vmem:[#allocation3 + $0x10] sm:$0xff] }
0x182c   :  { %v1601_v2 = vmul.f32 %v1599_v1, %v1595_v63 }
0x182e   :  { %1603 = vrot.lane.b32.xlu0 %v1601_v2, %s3459_s25 }
0x18a0   :  { %v1604_v3 = vpop.permute.xlu0 %1603 }
0x18a1   :  { %1607 = vst.msk [vmem:[#allocation5 + $0x28] sm:$0xff] %vm362_vm3, %v1604_v3  ;;  %3048 = vmatmul.mubr.msk.f32.vlgmr.msra.gmra.mrb[18].mxu1 %vm362_vm3, %v1604_v3 }
0x18a2   :  { %3222 = vmatpush3.bf16.msra.mxu1 %v3803_v20  ;;  %3069 = vmatprep.mubr.msk.f32.mxu1 %vm3455_vm1, %v3456_v18 }
0x18a3   :  { %3223 = vmatprep.subr.bf16.mxu1 %v3454_v8 }
0x18a6   :  { %3225 = vmatpush3.bf16.msra.mxu1 %v3814_v25 }
0x18a7   :  { %3232 = vmatprep.subr.bf16.mxu1 %v3454_v8 }
0x1974   :  { %v1679_v4 = vpop.f32.mrb[18].mxu1 }
0x1975   :  { %v1680_v5 = vadd.f32 %v3833_v29, %v1679_v4  ;;  %v3049_v6 = vpop.f32.mrb[19].mxu1  ;;  %v2187_v4 = vld [vmem:[%s4172_s10] sm:$0xff] }
0x1977   :  { %1691 = vrot.lane.b32.xlu1 %v1680_v5, %s3458_s20  ;;  %v1683_v11 = vadd.f32 %v1680_v5, %v1609_v10 }
0x1979   :  { %v2732_v12 = vmul.f32 -1.442695, %v1683_v11 }
0x197b   :  { %1711 = vperm.xlu1 %3272, %v3769_v35   ;;  %3334 = vpow2.f32 %v2732_v12 }
0x1985   :  { %v3335_v15 = vpop.eup %3334 }
0x1986   :  { %v1687_v16 = vadd.f32 1.0, %v3335_v15 }
0x1988   :  { %3336 = vrcp.f32 %v1687_v16 }
0x1992   :  { %v3337_v17 = vpop.eup %3336 }
0x1993   :  { %v1701_v27 = vsub.f32 1.0, %v3337_v17  ;;  %v1707_v28 = vmul.f32 %v3337_v17, %v1601_v2 }
0x19e9   :  { %v1692_v19 = vpop.permute.xlu1 %1691 }
0x19ea   :  { %v1694_v21 = vmul.f32 %v3337_v17, %v1692_v19 }
0x19ec   :  { %1696 = vrot.lane.b32.xlu0 %v1694_v21, %s3458_s20  ;;  %v2189_v21 = vld [vmem:[%s4172_s10 + $0x10] sm:$0xff] }
0x19fa   :  { %v1712_v32 = vpop.permute.xlu1 %1711 }
0x1a5e   :  { %v1697_v22 = vpop.permute.xlu0 %1696 }
0x1a5f   :  { %v1699_v23 = vadd.f32 %v1697_v22, %v1609_v10  ;;  %v2190_v22 = vld [vmem:[%s4172_s10 + $0x18] sm:$0xff] }
0x1a61   :  { %3338 = vtanh.f32 %v1699_v23  ;;  %v3250_v23 = vpack.c.bf16 %v2190_v22, %v2189_v21  ;;  %v4011_v21 = vld [vmem:[%s4163_s1] sm:$0xff] }
0x1a6b   :  { %v3339_v26 = vpop.eup %3338 }
0x1a6c   :  { %1703 = vrot.lane.b32.xlu0 %v3339_v26, %s3459_s25 }
0x1ade   :  { %v1704_v35 = vpop.permute.xlu0 %1703 }
0x1adf   :  { %v1706_v30 = vmul.f32 %v1704_v35, %v1701_v27  ;;  %v3951_v27 = vld [vmem:[#allocation4] sm:$0xff]  ;;  %v3955_v35 = vld [vmem:[#allocation4 + $0x8] sm:$0xff] }
0x1ae1   :  { %v1708_v31 = vadd.f32 %v1707_v28, %v1706_v30  ;;  %v3959_v28 = vld [vmem:[#allocation4 + $0x10] sm:$0xff]  ;;  %v3963_v30 = vld [vmem:[#allocation4 + $0x18] sm:$0xff] }
0x1ae3   :  { %v1714_v33 = vmul.f32 %v1712_v32, %v1708_v31  ;;  %v3967_v31 = vld [vmem:[#allocation4 + $0x20] sm:$0xff]  ;;  %v3971_v32 = vld [vmem:[#allocation4 + $0x28] sm:$0xff] }
0x1ae5   :  { %1716 = vrot.lane.b32.xlu1 %v1714_v33, %s3459_s25 }
0x1b57   :  { %v1717_v34 = vpop.permute.xlu1 %1716 }
0x1b58   :  { %1720 = vst.msk [vmem:[#allocation5 + $0x20] sm:$0xff] %vm362_vm3, %v1717_v34  ;;  %3059 = vmatmul.mubr.msk.f32.vlgmr.msra.gmra.mrb[20].mxu0 %vm362_vm3, %v1717_v34 }
0x1b59   :  { %3228 = vmatpush3.bf16.msra.mxu0 %v3803_v20  ;;  %3080 = vmatprep.mubr.msk.f32.mxu0 %vm3455_vm1, %v3456_v18 }
0x1b5a   :  { %3229 = vmatprep.subr.bf16.mxu0 %v3454_v8 }
0x1b5d   :  { %3231 = vmatpush3.bf16.msra.mxu0 %v3814_v25 }
0x1c2b   :  { %v1792_v36 = vpop.f32.mrb[20].mxu0 }
0x1c2c   :  { %v1793_v37 = vadd.f32 %v3833_v29, %v1792_v36  ;;  %v3060_v38 = vpop.f32.mrb[21].mxu0 }
0x1c2e   :  { %1804 = vrot.lane.b32.xlu0 %v1793_v37, %s3458_s20  ;;  %v1796_v40 = vadd.f32 %v1793_v37, %v1722_v39 }
0x1c30   :  { %v2735_v41 = vmul.f32 -1.442695, %v1796_v40 }
0x1c32   :  { %1824 = vperm.xlu0 %3273, %v3750_v9   ;;  %3340 = vpow2.f32 %v2735_v41 }
0x1c3c   :  { %v3341_v42 = vpop.eup %3340 }
0x1c3d   :  { %v1800_v43 = vadd.f32 1.0, %v3341_v42 }
0x1c3f   :  { %3342 = vrcp.f32 %v1800_v43 }
0x1c49   :  { %v3343_v44 = vpop.eup %3342 }
0x1c4a   :  { %v1814_v52 = vsub.f32 1.0, %v3343_v44  ;;  %v1820_v54 = vmul.f32 %v3343_v44, %v1714_v33  ;;  %v3975_v33 = vld [vmem:[#allocation4 + $0x30] sm:$0xff] }
0x1ca0   :  { %v1805_v45 = vpop.permute.xlu0 %1804 }
0x1ca1   :  { %v1807_v46 = vmul.f32 %v3343_v44, %v1805_v45  ;;  %v1948_v44 = vld [vmem:[#allocation3 + $0x8] sm:$0xff] }
0x1ca3   :  { %1809 = vrot.lane.b32.xlu1 %v1807_v46, %s3458_s20 }
0x1cb1   :  { %v1825_v57 = vpop.permute.xlu0 %1824 }
0x1d15   :  { %v1810_v48 = vpop.permute.xlu1 %1809 }
0x1d16   :  { %v1812_v49 = vadd.f32 %v1810_v48, %v1722_v39 }
0x1d18   :  { %3344 = vtanh.f32 %v1812_v49 }
0x1d22   :  { %v3345_v51 = vpop.eup %3344 }
0x1d23   :  { %1816 = vrot.lane.b32.xlu1 %v3345_v51, %s3459_s25 }
0x1d95   :  { %v1817_v9 = vpop.permute.xlu1 %1816 }
0x1d96   :  { %v1819_v55 = vmul.f32 %v1817_v9, %v1814_v52 }
0x1d98   :  { %v1821_v56 = vadd.f32 %v1820_v54, %v1819_v55 }
0x1d9a   :  { %v1827_v58 = vmul.f32 %v1825_v57, %v1821_v56 }
0x1d9c   :  { %1829 = vrot.lane.b32.xlu0 %v1827_v58, %s3459_s25 }
0x1e0e   :  { %v1830_v59 = vpop.permute.xlu0 %1829 }
0x1e0f   :  { %1833 = vst.msk [vmem:[#allocation5 + $0x18] sm:$0xff] %vm362_vm3, %v1830_v59  ;;  %3070 = vmatmul.mubr.msk.f32.vlgmr.msra.gmra.mrb[20].mxu1 %vm362_vm3, %v1830_v59 }
0x1e10   :  { %3234 = vmatpush3.bf16.msra.mxu1 %v3803_v20  ;;  %3091 = vmatprep.mubr.msk.f32.mxu1 %vm3455_vm1, %v3456_v18 }
0x1e11   :  { %3235 = vmatprep.subr.bf16.mxu1 %v3454_v8 }
0x1e14   :  { %3237 = vmatpush3.bf16.msra.mxu1 %v3814_v25 }
0x1ee2   :  { %v1905_v7 = vpop.f32.mrb[20].mxu1 }
0x1ee3   :  { %v1906_v61 = vadd.f32 %v3833_v29, %v1905_v7  ;;  %v3071_v60 = vpop.f32.mrb[21].mxu1 }
0x1ee5   :  { %1917 = vrot.lane.b32.xlu1 %v1906_v61, %s3458_s20  ;;  %v1909_v13 = vadd.f32 %v1906_v61, %v1835_v62 }
0x1ee7   :  { %v2738_v63 = vmul.f32 -1.442695, %v1909_v13 }
0x1ee9   :  { %1937 = vperm.xlu1 %3272, %v3731_v53   ;;  %3346 = vpow2.f32 %v2738_v63  ;;  %v2188_v53 = vld [vmem:[%s4172_s10 + $0x8] sm:$0xff]  ;;  %v1158_v63 = vld [vmem:[#allocation2 + $0x38] sm:$0xff] }
0x1eea   :  { %v3246_v5 = vpack.c.bf16 %v2188_v53, %v2187_v4 }
0x1eec   :  { %3247 = vmatprep.subr.bf16.mxu0 %v3246_v5 }
0x1ef3   :  { %v3347_v20 = vpop.eup %3346 }
0x1ef4   :  { %v1913_v1 = vadd.f32 1.0, %v3347_v20 }
0x1ef6   :  { %3348 = vrcp.f32 %v1913_v1 }
0x1f00   :  { %v3349_v18 = vpop.eup %3348 }
0x1f01   :  { %v1927_v10 = vsub.f32 1.0, %v3349_v18  ;;  %v1933_v12 = vmul.f32 %v3349_v18, %v1827_v58 }
0x1f57   :  { %v1918_v2 = vpop.permute.xlu1 %1917 }
0x1f58   :  { %v1920_v8 = vmul.f32 %v3349_v18, %v1918_v2 }
0x1f5a   :  { %1922 = vrot.lane.b32.xlu0 %v1920_v8, %s3458_s20 }
0x1f68   :  { %v1938_v17 = vpop.permute.xlu1 %1937 }
0x1fcc   :  { %v1923_v25 = vpop.permute.xlu0 %1922 }
0x1fcd   :  { %v1925_v3 = vadd.f32 %v1923_v25, %v1835_v62  ;;  %v3404_v62 = vld [vmem:[%s4167_s5] ss:$0 sm:$0xff] }
0x1fce   :  { %v1230_v13 = vadd.f32 %v3404_v62, %v3875_v14 }
0x1fcf   :  { %3350 = vtanh.f32 %v1925_v3 }
0x1fd0   :  { %v1233_v20 = vadd.f32 %v1230_v13, %v1158_v63 }
0x1fd2   :  { %v2721_v1 = vmul.f32 -1.442695, %v1233_v20 }
0x1fd9   :  { %v3351_v6 = vpop.eup %3350 }
0x1fda   :  { %1929 = vrot.lane.b32.xlu0 %v3351_v6, %s3459_s25  ;;  %v2060_v6 = vld [vmem:[#allocation3] sm:$0xff] }
0x204c   :  { %v1930_v11 = vpop.permute.xlu0 %1929 }
0x204d   :  { %v1932_v15 = vmul.f32 %v1930_v11, %v1927_v10 }
0x204f   :  { %v1934_v16 = vadd.f32 %v1933_v12, %v1932_v15 }
0x2051   :  { %v1940_v19 = vmul.f32 %v1938_v17, %v1934_v16 }
0x2053   :  { %1942 = vrot.lane.b32.xlu1 %v1940_v19, %s3459_s25 }
0x20c5   :  { %v1943_v26 = vpop.permute.xlu1 %1942 }
0x20c6   :  { %1946 = vst.msk [vmem:[#allocation5 + $0x10] sm:$0xff] %vm362_vm3, %v1943_v26  ;;  %3081 = vmatmul.mubr.msk.f32.vlgmr.msra.gmra.mrb[22].mxu0 %vm362_vm3, %v1943_v26 }
0x20c7   :  { %3249 = vmatpush3.bf16.msra.mxu0 %v3246_v5  ;;  %3122 = vmatprep.mubr.msk.f32.mxu0 %vm362_vm3, %v3951_v27 }
0x20c8   :  { %3251 = vmatprep.subr.bf16.mxu0 %v3250_v23 }
0x20cb   :  { %3253 = vmatpush3.bf16.msra.mxu0 %v3250_v23 }
0x20ce   :  { %3123 = vmatmul.mubr.msk.f32.vlgmr.msra.gmra.mrb[24].mxu0 %vm362_vm3, %v3955_v35 }
0x20cf   :  { %3125 = vmatprep.mubr.msk.f32.mxu0 %vm362_vm3, %v3959_v28 }
0x20d2   :  { %3126 = vmatmul.mubr.msk.f32.gmra.mrb[26].mxu0 %vm362_vm3, %v3963_v30 }
0x20d3   :  { %3128 = vmatprep.mubr.msk.f32.mxu0 %vm362_vm3, %v3967_v31 }
0x20d6   :  { %3129 = vmatmul.mubr.msk.f32.gmra.mrb[28].mxu0 %vm362_vm3, %v3971_v32 }
0x20d7   :  { %3131 = vmatprep.mubr.msk.f32.mxu0 %vm362_vm3, %v3975_v33 }
0x2199   :  { %v2018_v34 = vpop.f32.mrb[22].mxu0 }
0x219a   :  { %v2019_v36 = vadd.f32 %v3833_v29, %v2018_v34  ;;  %v3082_v37 = vpop.f32.mrb[23].mxu0 }
0x219b   :  { %v2191_v37 = vld [vmem:[%s4173_s11] sm:$0xff] }
0x219c   :  { %2030 = vrot.lane.b32.xlu0 %v2019_v36, %s3458_s20  ;;  %v2022_v45 = vadd.f32 %v2019_v36, %v1948_v44 }
0x219e   :  { %v2741_v46 = vmul.f32 -1.442695, %v2022_v45 }
0x21a0   :  { %2050 = vperm.xlu0 %3273, %v3712_v24   ;;  %3352 = vpow2.f32 %v2741_v46  ;;  %v2193_v46 = vld [vmem:[%s4173_s11 + $0x10] sm:$0xff] }
0x21a1   :  { %v3982_v38 = vpop.f32.mrb[24].mxu0 }
0x21a2   :  { %v3984_v39 = vpop.f32.mrb[25].mxu0 }
0x21a5   :  { %v3986_v40 = vpop.f32.mrb[26].mxu0 }
0x21a6   :  { %v3988_v41 = vpop.f32.mrb[27].mxu0 }
0x21a9   :  { %v3990_v42 = vpop.f32.mrb[28].mxu0 }
0x21aa   :  { %v3992_v43 = vpop.f32.mrb[29].mxu0  ;;  %v3353_v48 = vpop.eup %3352 }
0x21ab   :  { %v2026_v49 = vadd.f32 1.0, %v3353_v48  ;;  %v2194_v48 = vld [vmem:[%s4173_s11 + $0x18] sm:$0xff] }
0x21ad   :  { %3354 = vrcp.f32 %v2026_v49  ;;  %v3242_v49 = vpack.c.bf16 %v2194_v48, %v2193_v46 }
0x21b7   :  { %v3355_v24 = vpop.eup %3354 }
0x21b8   :  { %v2040_v56 = vsub.f32 1.0, %v3355_v24  ;;  %v2046_v58 = vmul.f32 %v3355_v24, %v1940_v19 }
0x220e   :  { %v2031_v51 = vpop.permute.xlu0 %2030 }
0x220f   :  { %v2033_v52 = vmul.f32 %v3355_v24, %v2031_v51 }
0x2211   :  { %2035 = vrot.lane.b32.xlu1 %v2033_v52, %s3458_s20 }
0x221f   :  { %v2051_v61 = vpop.permute.xlu0 %2050 }
0x2283   :  { %v2036_v9 = vpop.permute.xlu1 %2035 }
0x2284   :  { %v2038_v54 = vadd.f32 %v2036_v9, %v1948_v44  ;;  %v2192_v44 = vld [vmem:[%s4173_s11 + $0x8] sm:$0xff] }
0x2285   :  { %v3238_v45 = vpack.c.bf16 %v2192_v44, %v2191_v37 }
0x2286   :  { %3356 = vtanh.f32 %v2038_v54 }
0x2287   :  { %3358 = vpow2.f32 %v2721_v1  ;;  %3239 = vmatprep.subr.bf16.mxu1 %v3238_v45  ;;  %v4042_v1 = vld [vmem:[#allocation5 + $0x10] sm:$0xff] }
0x2290   :  { %v3357_v55 = vpop.eup %3356 }
0x2291   :  { %2042 = vrot.lane.b32.xlu1 %v3357_v55, %s3459_s25  ;;  %v3359_v18 = vpop.eup %3358 }
0x2292   :  { %v1237_v2 = vadd.f32 1.0, %v3359_v18 }
0x2294   :  { %3360 = vrcp.f32 %v1237_v2  ;;  %v4050_v2 = vld [vmem:[#allocation5 + $0x18] sm:$0xff] }
0x229e   :  { %v3361_v25 = vpop.eup %3360 }
0x2303   :  { %v2043_v57 = vpop.permute.xlu1 %2042 }
0x2304   :  { %v2045_v59 = vmul.f32 %v2043_v57, %v2040_v56  ;;  %v1251_v56 = vsub.f32 1.0, %v3361_v25 }
0x2306   :  { %v2047_v7 = vadd.f32 %v2046_v58, %v2045_v59  ;;  %v1257_v58 = vmul.f32 %v3361_v25, %v3854_v0 }
0x2308   :  { %v2053_v60 = vmul.f32 %v2051_v61, %v2047_v7 }
0x230a   :  { %2055 = vrot.lane.b32.xlu0 %v2053_v60, %s3459_s25 }
0x230e   :  { %1241 = vrot.lane.b32.xlu0 %v1230_v13, %s3458_s20 }
0x237c   :  { %v2056_v8 = vpop.permute.xlu0 %2055 }
0x237d   :  { %2059 = vst.msk [vmem:[#allocation5 + $0x8] sm:$0xff] %vm362_vm3, %v2056_v8  ;;  %3092 = vmatmul.mubr.msk.f32.vlgmr.msra.gmra.mrb[22].mxu1 %vm362_vm3, %v2056_v8  ;;  %v4054_v8 = vld [vmem:[#allocation5 + $0x20] sm:$0xff] }
0x237e   :  { %3241 = vmatpush3.bf16.msra.mxu1 %v3238_v45 }
0x237f   :  { %3243 = vmatprep.subr.bf16.mxu1 %v3242_v49 }
0x2380   :  { %v1242_v3 = vpop.permute.xlu0 %1241 }
0x2381   :  { %v1244_v4 = vmul.f32 %v3361_v25, %v1242_v3  ;;  %v4058_v25 = vld [vmem:[#allocation5 + $0x28] sm:$0xff]  ;;  %v4062_v3 = vld [vmem:[#allocation5 + $0x30] sm:$0xff] }
0x2382   :  { %3245 = vmatpush3.bf16.msra.mxu1 %v3242_v49 }
0x2383   :  { %1246 = vrot.lane.b32.xlu0 %v1244_v4, %s3458_s20  ;;  %v4066_v4 = vld [vmem:[#allocation5 + $0x38] sm:$0xff] }
0x2384   :  { %v4038_v0 = vld [vmem:[#allocation5 + $0x8] sm:$0xff] }
0x2450   :  { %v2130_v14 = vpop.f32.mrb[22].mxu1 }
0x2451   :  { %v2131_v53 = vadd.f32 %v3833_v29, %v2130_v14  ;;  %v3093_v5 = vpop.f32.mrb[23].mxu1  ;;  %v1247_v29 = vpop.permute.xlu0 %1246 }
0x2452   :  { %v1249_v26 = vadd.f32 %v1247_v29, %v1158_v63 }
0x2453   :  { %2142 = vrot.lane.b32.xlu1 %v2131_v53, %s3458_s20  ;;  %v2134_v10 = vadd.f32 %v2131_v53, %v2060_v6  ;;  %v2760_v53 = vld [vmem:[%s4174_s12] ss:$0 sm:$0xff] }
0x2455   :  { %v2743_v11 = vmul.f32 -1.442695, %v2134_v10 }
0x2457   :  { %3362 = vpow2.f32 %v2743_v11 }
0x2461   :  { %v3363_v12 = vpop.eup %3362 }
0x2462   :  { %v2138_v15 = vadd.f32 1.0, %v3363_v12 }
0x2464   :  { %3364 = vrcp.f32 %v2138_v15 }
0x246e   :  { %v3365_v16 = vpop.eup %3364 }
0x246f   :  { %v2152_v24 = vsub.f32 1.0, %v3365_v16  ;;  %v2158_v52 = vmul.f32 %v3365_v16, %v2053_v60 }
0x24c5   :  { %v2143_v17 = vpop.permute.xlu1 %2142 }
0x24c6   :  { %v2145_v19 = vmul.f32 %v3365_v16, %v2143_v17 }
0x24c8   :  { %2147 = vrot.lane.b32.xlu1 %v2145_v19, %s3458_s20 }
0x24cc   :  { %2162 = vperm.xlu1 %3272, %v4011_v21  }
0x24d0   :  { %1261 = vperm.xlu1 %3272, %v3847_v50  }
0x253a   :  { %v2148_v22 = vpop.permute.xlu1 %2147 }
0x253b   :  { %v2150_v23 = vadd.f32 %v2148_v22, %v2060_v6 }
0x253d   :  { %3366 = vtanh.f32 %v2150_v23 }
0x253e   :  { %3368 = vtanh.f32 %v1249_v26 }
0x2547   :  { %v3367_v34 = vpop.eup %3366 }
0x2548   :  { %2154 = vrot.lane.b32.xlu0 %v3367_v34, %s3459_s25  ;;  %v3369_v36 = vpop.eup %3368 }
0x254b   :  { %v2163_v54 = vpop.permute.xlu1 %2162 }
0x254c   :  { %1253 = vrot.lane.b32.xlu0 %v3369_v36, %s3459_s25 }
0x254f   :  { %v1262_v62 = vpop.permute.xlu1 %1261 }
0x25ba   :  { %v2155_v51 = vpop.permute.xlu0 %2154 }
0x25bb   :  { %v2157_v9 = vmul.f32 %v2155_v51, %v2152_v24 }
0x25bd   :  { %v2159_v55 = vadd.f32 %v2158_v52, %v2157_v9 }
0x25be   :  { %v1254_v57 = vpop.permute.xlu0 %1253 }
0x25bf   :  { %v1256_v59 = vmul.f32 %v1254_v57, %v1251_v56  ;;  %v2165_v7 = vmul.f32 %v2163_v54, %v2159_v55 }
0x25c1   :  { %v1258_v61 = vadd.f32 %v1257_v58, %v1256_v59  ;;  %2167 = vrot.lane.b32.xlu1 %v2165_v7, %s3459_s25 }
0x25c3   :  { %v1264_v13 = vmul.f32 %v1262_v62, %v1258_v61 }
0x25c5   :  { %1266 = vrot.lane.b32.xlu0 %v1264_v13, %s3459_s25 }
0x2633   :  { %v2168_v63 = vpop.permute.xlu1 %2167 }
0x2634   :  { %2170 = vst.msk [vmem:[#allocation5] sm:$0xff] %vm362_vm3, %v2168_v63 }
0x2637   :  { %v1267_v60 = vpop.permute.xlu0 %1266 }
0x2638   :  { %1270 = vst.msk [vmem:[#allocation4 + $0x38] sm:$0xff] %vm362_vm3, %v1267_v60 }
0x263b   :  { %v4034_v20 = vld [vmem:[#allocation5] sm:$0xff] }
0x263c   :  { %3102 = vmatprep.mubr.msk.f32.mxu1 %vm362_vm3, %v4034_v20 }
0x263d   :  { %3103 = vmatmul.mubr.msk.f32.vlgmr.msra.gmra.mrb[24].mxu1 %vm362_vm3, %v4038_v0 }
0x263e   :  { %3105 = vmatprep.mubr.msk.f32.mxu1 %vm362_vm3, %v4042_v1 }
0x263f   :  { %v4046_v18 = vld [vmem:[#allocation4 + $0x38] sm:$0xff] }
0x2640   :  { %3132 = vmatmul.mubr.msk.f32.gmra.mrb[30].mxu0 %vm362_vm3, %v4046_v18 }
0x2641   :  { %3106 = vmatmul.mubr.msk.f32.gmra.mrb[26].mxu1 %vm362_vm3, %v4050_v2 }
0x2642   :  { %3108 = vmatprep.mubr.msk.f32.mxu1 %vm362_vm3, %v4054_v8 }
0x2645   :  { %3109 = vmatmul.mubr.msk.f32.gmra.mrb[28].mxu1 %vm362_vm3, %v4058_v25 }
0x2646   :  { %3111 = vmatprep.mubr.msk.f32.mxu1 %vm362_vm3, %v4062_v3 }
0x2649   :  { %3112 = vmatmul.mubr.msk.f32.gmra.mrb[30].mxu1 %vm362_vm3, %v4066_v4 }
0x2710   :  { %v3104_v14 = vpop.f32.mrb[24].mxu1 }
0x2711   :  { %v2420_v5 = vadd.f32 %v3982_v38, %v3104_v14  ;;  %v2285_v6 = vpop.f32.mrb[25].mxu1 }
0x2712   :  { %v2415_v10 = vadd.f32 %v3984_v39, %v2285_v6 }
0x2713   :  { %v2461_v11 = vadd.f32 %v2760_v53, %v2420_v5  ;;  %v3133_v12 = vpop.f32.mrb[30].mxu0 }
0x2714   :  { %v2460_v15 = vadd.f32 %v2760_v53, %v2415_v10  ;;  %v3107_v16 = vpop.f32.mrb[26].mxu1  ;;  %v2444_v17 = vpop.f32.mrb[31].mxu0 }
0x2715   :  { %3370 = vtanh.f32 %v2461_v11  ;;  %v2430_v19 = vadd.f32 %v3986_v40, %v3107_v16  ;;  %v2295_v29 = vpop.f32.mrb[27].mxu1 }
0x2716   :  { %3372 = vtanh.f32 %v2460_v15  ;;  %v2425_v22 = vadd.f32 %v3988_v41, %v2295_v29  ;;  %v2761_v41 = vld [vmem:[%s4175_s13] ss:$0 sm:$0xff] }
0x2717   :  { %v2463_v23 = vadd.f32 %v2760_v53, %v2430_v19 }
0x2718   :  { %v2462_v26 = vadd.f32 %v2760_v53, %v2425_v22  ;;  %v3110_v34 = vpop.f32.mrb[28].mxu1 }
0x2719   :  { %3374 = vtanh.f32 %v2463_v23  ;;  %v2440_v38 = vadd.f32 %v3990_v42, %v3110_v34  ;;  %v2305_v36 = vpop.f32.mrb[29].mxu1 }
0x271a   :  { %3376 = vtanh.f32 %v2462_v26  ;;  %v2435_v39 = vadd.f32 %v3992_v43, %v2305_v36 }
0x271b   :  { %v2465_v37 = vadd.f32 %v2760_v53, %v2440_v38 }
0x271c   :  { %v2464_v44 = vadd.f32 %v2760_v53, %v2435_v39  ;;  %v3113_v45 = vpop.f32.mrb[30].mxu1 }
0x271d   :  { %3378 = vtanh.f32 %v2465_v37  ;;  %v2450_v46 = vadd.f32 %v3133_v12, %v3113_v45  ;;  %v2315_v40 = vpop.f32.mrb[31].mxu1  ;;  %v2533_v37 = vld [vmem:[%s4163_s1 + $0x8] sm:$0xff] }
0x271e   :  { %3380 = vtanh.f32 %v2464_v44  ;;  %v2445_v48 = vadd.f32 %v2444_v17, %v2315_v40 }
0x271f   :  { %v3371_v49 = vpop.eup %3370  ;;  %v2467_v24 = vadd.f32 %v2760_v53, %v2450_v46 }
0x2720   :  { %v3373_v42 = vpop.eup %3372  ;;  %v2466_v51 = vadd.f32 %v2760_v53, %v2445_v48  ;;  %v2484_v52 = vmul.f32 %v3371_v49, %v2761_v41 }
0x2721   :  { %3382 = vtanh.f32 %v2467_v24  ;;  %v2483_v43 = vmul.f32 %v3373_v42, %v2761_v41  ;;  %v2534_v42 = vld [vmem:[%s4163_s1 + $0x10] sm:$0xff] }
0x2722   :  { %3384 = vtanh.f32 %v2466_v51  ;;  %v2495_v9 = vsel %vm2491_vm4, %v2484_v52, 0.0 }
0x2723   :  { %v3375_v54 = vpop.eup %3374  ;;  %2496 = vadd.xlane.f32.xlu0 %v2495_v9  ;;  %v2492_v55 = vsel %vm2491_vm4, %v2483_v43, 0.0  ;;  %v2535_v43 = vld [vmem:[%s4163_s1 + $0x18] sm:$0xff] }
0x2724   :  { %v3377_v56 = vpop.eup %3376  ;;  %2493 = vadd.xlane.f32.xlu1 %v2492_v55  ;;  %v2486_v57 = vmul.f32 %v3375_v54, %v2761_v41 }
0x2725   :  { %v2485_v58 = vmul.f32 %v3377_v56, %v2761_v41 }
0x2726   :  { %v2501_v59 = vsel %vm2491_vm4, %v2486_v57, 0.0  ;;  %v2536_v57 = vld [vmem:[%s4163_s1 + $0x20] sm:$0xff] }
0x2727   :  { %v3379_v7 = vpop.eup %3378  ;;  %v2498_v61 = vsel %vm2491_vm4, %v2485_v58, 0.0 }
0x2728   :  { %v3381_v62 = vpop.eup %3380  ;;  %2499 = vadd.xlane.f32.xlu0 %v2498_v61  ;;  %2502 = vadd.xlane.f32.xlu1 %v2501_v59  ;;  %v2488_v13 = vmul.f32 %v3379_v7, %v2761_v41  ;;  %v2537_v59 = vld [vmem:[%s4163_s1 + $0x28] sm:$0xff]  ;;  %s3460_s1 = smov [#allocation9]  }
0x2729   :  { %v2487_v63 = vmul.f32 %v3381_v62, %v2761_v41  ;;  %s2668_s17 = sshll.u32 %s3460_s1, 4  ;;  %s2669_s17 = int_to_ptr.vmem [resolvable:$true] %s2668_s17 }
0x272a   :  { %v2507_v60 = vsel %vm2491_vm4, %v2488_v13, 0.0  ;;  %s3427_s4 = scalar_lea.vmem %s2669_s17, 256  ;;  %p3432_p9 = scmp.lt.s32.totalorder %s2669_s17, %s2669_s17 }
0x272b   :  { %v3383_v14 = vpop.eup %3382  ;;  %v2504_v53 = vsel %vm2491_vm4, %v2487_v63, 0.0  ;;  %p3428_p8 = scmp.ne.s32.totalorder %s2669_s17, %s3427_s4  ;;  %p3433_p10 = scmp.lt.s32.totalorder %s3427_s4, %s3427_s4 }
0x272c   :  { %v3385_v5 = vpop.eup %3384  ;;  %2505 = vadd.xlane.f32.xlu0 %v2504_v53  ;;  %2508 = vadd.xlane.f32.xlu1 %v2507_v60  ;;  %v2490_v6 = vmul.f32 %v3383_v14, %v2761_v41 }
0x272d   :  { %v2489_v10 = vmul.f32 %v3385_v5, %v2761_v41  ;;  %p3434_p11 = por %p3433_p10, %p3432_p9 }
0x272e   :  { %v2513_v11 = vsel %vm2491_vm4, %v2490_v6, 0.0 }
0x272f   :  { %v2510_v12 = vsel %vm2491_vm4, %v2489_v10, 0.0  ;;  %p3435_p12 = pnand %p3434_p11, %p3428_p8 }
0x2730   :  { %2511 = vadd.xlane.f32.xlu0 %v2510_v12  ;;  %2514 = vadd.xlane.f32.xlu1 %v2513_v11 }
0x27b0   :  { %v2497_v15 = vpop.xlane.xlu0 %2496 }
0x27b1   :  { %v2518_v16 = vmul.f32 1.442695, %v2497_v15  ;;  %v2494_v17 = vpop.xlane.xlu1 %2493 }
0x27b2   :  { %v2516_v19 = vmul.f32 1.442695, %v2494_v17 }
0x27b3   :  { %3386 = vpow2.f32 %v2518_v16 }
0x27b4   :  { %3388 = vpow2.f32 %v2516_v19 }
0x27b5   :  { %v2500_v29 = vpop.xlane.xlu0 %2499  ;;  %v2503_v22 = vpop.xlane.xlu1 %2502 }
0x27b6   :  { %v2520_v23 = vmul.f32 1.442695, %v2500_v29  ;;  %v2522_v26 = vmul.f32 1.442695, %v2503_v22 }
0x27b8   :  { %3390 = vpow2.f32 %v2520_v23 }
0x27b9   :  { %3392 = vpow2.f32 %v2522_v26  ;;  %v2506_v34 = vpop.xlane.xlu0 %2505  ;;  %v2509_v38 = vpop.xlane.xlu1 %2508 }
0x27ba   :  { %v2524_v36 = vmul.f32 1.442695, %v2506_v34  ;;  %v2526_v39 = vmul.f32 1.442695, %v2509_v38 }
0x27bc   :  { %3394 = vpow2.f32 %v2524_v36 }
0x27bd   :  { %v3387_v44 = vpop.eup %3386  ;;  %3396 = vpow2.f32 %v2526_v39  ;;  %v2512_v45 = vpop.xlane.xlu0 %2511 }
0x27be   :  { %v2515_v46 = vpop.xlane.xlu1 %2514  ;;  %v3389_v40 = vpop.eup %3388  ;;  %v2528_v41 = vmul.f32 1.442695, %v2512_v45  ;;  %v2541_v49 = vmul.f32 %v3387_v44, %v2533_v37 }
0x27bf   :  { %v2530_v48 = vmul.f32 1.442695, %v2515_v46  ;;  %v2540_v24 = vmul.f32 %v3389_v40, %v4011_v21 }
0x27c0   :  { %3398 = vpow2.f32 %v2528_v41  ;;  %2555 = vperm.xlu1 %3272, %v2541_v49   ;;  %v2636_v51 = vsel %vm2634_vm5, %v2541_v49, 0.0 }
0x27c1   :  { %3400 = vpow2.f32 %v2530_v48  ;;  %2550 = vperm.xlu0 %3273, %v2540_v24   ;;  %v2635_v52 = vsel %vm2634_vm5, %v2540_v24, 0.0 }
0x27c2   :  { %v3391_v9 = vpop.eup %3390  ;;  %v2637_v21 = vadd.f32 %v2636_v51, %v2635_v52 }
0x27c3   :  { %v3393_v54 = vpop.eup %3392  ;;  %v2542_v55 = vmul.f32 %v3391_v9, %v2534_v42 }
0x27c4   :  { %v2543_v56 = vmul.f32 %v3393_v54, %v2535_v43 }
0x27c5   :  { %v2638_v58 = vsel %vm2634_vm5, %v2542_v55, 0.0  ;;  %2560 = vperm.xlu1 %3272, %v2542_v55  }
0x27c6   :  { %v3395_v7 = vpop.eup %3394  ;;  %v2639_v61 = vadd.f32 %v2638_v58, %v2637_v21  ;;  %2565 = vperm.xlu0 %3273, %v2543_v56   ;;  %v2640_v13 = vsel %vm2634_vm5, %v2543_v56, 0.0 }
0x27c7   :  { %v3397_v62 = vpop.eup %3396  ;;  %v2544_v63 = vmul.f32 %v3395_v7, %v2536_v57 }
0x27c8   :  { %v2641_v60 = vadd.f32 %v2640_v13, %v2639_v61  ;;  %v2545_v14 = vmul.f32 %v3397_v62, %v2537_v59 }
0x27c9   :  { %v2642_v53 = vsel %vm2634_vm5, %v2544_v63, 0.0  ;;  %2570 = vperm.xlu1 %3272, %v2544_v63  }
0x27ca   :  { %v3399_v5 = vpop.eup %3398  ;;  %v2643_v6 = vadd.f32 %v2642_v53, %v2641_v60  ;;  %2575 = vperm.xlu0 %3273, %v2545_v14   ;;  %v2644_v11 = vsel %vm2634_vm5, %v2545_v14, 0.0 }
0x27cb   :  { %v3401_v10 = vpop.eup %3400  ;;  %v2546_v12 = vmul.f32 %v3399_v5, %v3841_v47 }
0x27cc   :  { %v2645_v15 = vadd.f32 %v2644_v11, %v2643_v6  ;;  %v2547_v16 = vmul.f32 %v3401_v10, %v3847_v50 }
0x27cd   :  { %v2646_v17 = vsel %vm2634_vm5, %v2546_v12, 0.0  ;;  %2580 = vperm.xlu1 %3272, %v2546_v12  }
0x27ce   :  { %v2647_v19 = vadd.f32 %v2646_v17, %v2645_v15  ;;  %2585 = vperm.xlu0 %3273, %v2547_v16   ;;  %v2648_v29 = vsel %vm2634_vm5, %v2547_v16, 0.0 }
0x27d0   :  { %v2649_v22 = vadd.f32 %v2648_v29, %v2647_v19 }
0x27d2   :  { %v2650_v23 = vadd.f32 0.0001, %v2649_v22 }
0x27d4   :  { %3402 = vrcp.f32 %v2650_v23 }
0x27de   :  { %v3403_v26 = vpop.eup %3402 }
0x27df   :  { %2655 = vperm.xlu1 %3272, %v3403_v26  }
0x283f   :  { %v2556_v34 = vpop.permute.xlu1 %2555 }
0x2840   :  { %v2589_v38 = vmul.f32 %v2556_v34, %v3955_v35  ;;  %v2612_v47 = vmul.f32 %v2556_v34, %v4038_v0  ;;  %v2551_v36 = vpop.permute.xlu0 %2550 }
0x2841   :  { %v2588_v50 = vmul.f32 %v2551_v36, %v3951_v27  ;;  %v2611_v39 = vmul.f32 %v2551_v36, %v4034_v20 }
0x2842   :  { %v2597_v37 = vsel %vm362_vm3, %v2589_v38, 0.0  ;;  %v2620_v44 = vsel %vm362_vm3, %v2612_v47, 0.0 }
0x2843   :  { %v2596_v45 = vsel %vm362_vm3, %v2588_v50, 0.0  ;;  %v2619_v46 = vsel %vm362_vm3, %v2611_v39, 0.0 }
0x2844   :  { %v2561_v40 = vpop.permute.xlu1 %2560  ;;  %v2598_v0 = vadd.f32 %v2597_v37, %v2596_v45  ;;  %v2621_v49 = vadd.f32 %v2620_v44, %v2619_v46 }
0x2845   :  { %v2566_v41 = vpop.permute.xlu0 %2565  ;;  %v2590_v48 = vmul.f32 %v2561_v40, %v3959_v28  ;;  %v2613_v35 = vmul.f32 %v2561_v40, %v4042_v1 }
0x2846   :  { %v2591_v24 = vmul.f32 %v2566_v41, %v3963_v30  ;;  %v2614_v42 = vmul.f32 %v2566_v41, %v4050_v2 }
0x2847   :  { %v2599_v27 = vsel %vm362_vm3, %v2590_v48, 0.0  ;;  %v2622_v20 = vsel %vm362_vm3, %v2613_v35, 0.0 }
0x2848   :  { %v2571_v51 = vpop.permute.xlu1 %2570  ;;  %v2600_v52 = vadd.f32 %v2599_v27, %v2598_v0  ;;  %v2623_v43 = vadd.f32 %v2622_v20, %v2621_v49  ;;  %v2601_v28 = vsel %vm362_vm3, %v2591_v24, 0.0  ;;  %v2624_v1 = vsel %vm362_vm3, %v2614_v42, 0.0 }
0x2849   :  { %v2592_v9 = vmul.f32 %v2571_v51, %v3967_v31  ;;  %v2615_v54 = vmul.f32 %v2571_v51, %v4054_v8  ;;  %v2576_v55 = vpop.permute.xlu0 %2575 }
0x284a   :  { %v2602_v21 = vadd.f32 %v2601_v28, %v2600_v52  ;;  %v2625_v56 = vadd.f32 %v2624_v1, %v2623_v43  ;;  %v2593_v2 = vmul.f32 %v2576_v55, %v3971_v32  ;;  %v2616_v59 = vmul.f32 %v2576_v55, %v4058_v25 }
0x284b   :  { %v2603_v57 = vsel %vm362_vm3, %v2592_v9, 0.0  ;;  %v2626_v30 = vsel %vm362_vm3, %v2615_v54, 0.0 }
0x284c   :  { %v2581_v58 = vpop.permute.xlu1 %2580  ;;  %v2604_v7 = vadd.f32 %v2603_v57, %v2602_v21  ;;  %v2627_v31 = vadd.f32 %v2626_v30, %v2625_v56  ;;  %v2605_v62 = vsel %vm362_vm3, %v2593_v2, 0.0  ;;  %v2628_v13 = vsel %vm362_vm3, %v2616_v59, 0.0 }
0x284d   :  { %v2594_v8 = vmul.f32 %v2581_v58, %v3975_v33  ;;  %v2617_v61 = vmul.f32 %v2581_v58, %v4062_v3  ;;  %v2586_v63 = vpop.permute.xlu0 %2585 }
0x284e   :  { %v2606_v60 = vadd.f32 %v2605_v62, %v2604_v7  ;;  %v2629_v14 = vadd.f32 %v2628_v13, %v2627_v31  ;;  %v2595_v32 = vmul.f32 %v2586_v63, %v4046_v18  ;;  %v2618_v25 = vmul.f32 %v2586_v63, %v4066_v4 }
0x284f   :  { %v2607_v53 = vsel %vm362_vm3, %v2594_v8, 0.0  ;;  %v2630_v5 = vsel %vm362_vm3, %v2617_v61, 0.0 }
0x2850   :  { %v2608_v6 = vadd.f32 %v2607_v53, %v2606_v60  ;;  %v2631_v10 = vadd.f32 %v2630_v5, %v2629_v14  ;;  %v2609_v33 = vsel %vm362_vm3, %v2595_v32, 0.0  ;;  %v2632_v3 = vsel %vm362_vm3, %v2618_v25, 0.0 }
0x2852   :  { %v2610_v11 = vadd.f32 %v2609_v33, %v2608_v6  ;;  %v2633_v12 = vadd.f32 %v2632_v3, %v2631_v10 }
0x285e   :  { %v2656_v15 = vpop.permute.xlu1 %2655 }
0x285f   :  { %v2658_v16 = vmul.f32 %v2656_v15, %v2610_v11  ;;  %v2660_v17 = vmul.f32 %v2656_v15, %v2633_v12 }
0x2861   :  { %2659 = vst.msk [vmem:[#allocation9] sm:$0xff] %vm362_vm3, %v2658_v16  ;;  %2662 = vst.msk [vmem:[#allocation9 + $0x8] sm:$0xff] %vm362_vm3, %v2660_v17 }
0x2862   :  { %3438 = shalt.err (!%p3435_p12)
}
0x2863   :  { %s3439_s0 = scalar_lea.hbm %s4176_s14, 256 }
0x2864   :  { %p3440_p13 = scmp.ne.s32.totalorder %s4176_s14, %s3439_s0  ;;  %p3443_p0 = scmp.lt.u32.totalorder %s3439_s0, %s4176_s14 }
0x2866   :  { %p3445_p1 = pnand %p3443_p0, %p3440_p13 }
0x2868   :  { %3448 = shalt.err (!%p3445_p1)
}
0x2869   :  { %s3461_s19 = smov 128   ;;  %s3462_s21 = smov 8  }
0x286a   :  { %2674 = dma.vmem_to_hbm [thread:$0]  %s2669_s17, 256, %s4176_s14, [#allocation8], %s3461_s19, %s3461_s19, %s3462_s21  }
0x286b   :  { %3451 = dma.done.wait [#allocation8], 256  }
0x286c   :  { %3452 = vsyncadd [#allocation8], 4294967040 }
0x286d   :  { %2678 = vsyncpa [#allocation7], 1 }
0x286e   :  { %2679 = vsyncpa [#allocation8], 1 }

</bundles_post_ra>
